<compile_context>
chip_gen: v7x
topology: tpu7x:2x2x1
jax: 0.10.0
libtpu: 0.0.40
codegen_flags: <defaults>
</compile_context>

<pallas_src>
import functools

import jax
import jax.numpy as jnp
from jax import lax
from jax.experimental import pallas as pl
from jax.experimental.pallas import tpu as pltpu


def _vmem_limit_bytes(need_bytes):
    # generous margin over the estimated working set, clamped to a range that is
    # valid on every TPU generation (>= default 16 MiB, <= v7x physical 64 MiB).
    return int(min(max(2 * need_bytes + (2 << 20), 16 * 2**20), 64 * 2**20))


# --------------------------------------------------------------------------
# Kernel 1: KxK "same" conv, 1 -> 1 channel (SRResNet k=9, SRDenseNet k=3).
# Pure VPU: K*K shifted-window scalar MACs on one image per grid step.
# --------------------------------------------------------------------------
def _conv_kk_1to1_kernel(x_ref, w_ref, b_ref, o_ref, pad_scr, *, K, H, W):
    # x_ref:   (1, H, W) VMEM (unpadded image block)
    # w_ref:   (K*K,) SMEM tap-major weights; b_ref: (1,) SMEM
    # o_ref:   (1, H, W) VMEM
    # pad_scr: (H+2p, W+2p) VMEM scratch, halo built in-kernel
    p = (K - 1) // 2
    Hp, Wp = H + 2 * p, W + 2 * p

    # Build zero halo in VMEM: zero the plane, overwrite the interior.
    pad_scr[...] = jnp.zeros((Hp, Wp), jnp.float32)
    pad_scr[p:p + H, p:p + W] = x_ref[0]

    # K*K taps as ref slices (on-demand vlds), 4 partial accumulators to break
    # the dependent add chain.
    n_acc = 4
    accs = [jnp.zeros((H, W), jnp.float32) for _ in range(n_acc)]
    accs[0] = jnp.full((H, W), b_ref[0], jnp.float32)
    for t in range(K * K):                              # static unroll over taps
        dy, dx = divmod(t, K)
        accs[t % n_acc] = accs[t % n_acc] + pad_scr[dy:dy + H, dx:dx + W] * w_ref[t]
    o_ref[0] = (accs[0] + accs[1]) + (accs[2] + accs[3])


def conv_kk_1to1(x_nhw, w_flat, b, *, K):
    """x_nhw: (N, H, W) f32; w_flat: (K*K,) f32; b: (1,) f32."""
    N, H, W = x_nhw.shape
    p = (K - 1) // 2
    Hp, Wp = H + 2 * p, W + 2 * p
    smem = pl.BlockSpec(memory_space=pltpu.MemorySpace.SMEM)
    # working set: 2x double-buffered in + out blocks, scratch plane, ~4 acc planes
    need = 4 * (2 * H * W + 2 * H * W + Hp * Wp + 4 * H * W)
    return pl.pallas_call(
        functools.partial(_conv_kk_1to1_kernel, K=K, H=H, W=W),
        out_shape=jax.ShapeDtypeStruct((N, H, W), jnp.float32),
        grid=(N,),
        in_specs=[pl.BlockSpec((1, H, W), lambda n: (n, 0, 0)), smem, smem],
        out_specs=pl.BlockSpec((1, H, W), lambda n: (n, 0, 0)),
        scratch_shapes=[pltpu.VMEM((Hp, Wp), jnp.float32)],
        compiler_params=pltpu.CompilerParams(
            dimension_semantics=("parallel",),
            vmem_limit_bytes=_vmem_limit_bytes(need)),
    )(x_nhw, w_flat, b)


# --------------------------------------------------------------------------
# Kernel 2: fused RRDBNet head:
#   Conv2d(1->C, 3x3) + PReLU + Conv2d(C->1, 3x3) + PReLU, one image per program.
# Single channel loop: each channel plane lives only in a tiny (H+2, W+2)
# zero-halo VMEM buffer; its conv2 taps are accumulated immediately.
# --------------------------------------------------------------------------
def _rrdb_extra_kernel(x_ref, w1_ref, b1_ref, a1_ref, w2_ref, b2_ref, a2_ref,
                       o_ref, xpad_scr, hbuf_scr, *, H, W, C, UNROLL):
    # x_ref:    (1, H, W) VMEM (unpadded image block)
    # w1_ref, w2_ref: (9, C) SMEM tap-major; b1_ref: (C,) SMEM
    # a1_ref, b2_ref, a2_ref: (1,) SMEM scalars
    # o_ref:    (1, H, W) VMEM
    # xpad_scr, hbuf_scr: (H+2, W+2) VMEM scratch planes (zero halo)
    Hp, Wp = H + 2, W + 2

    # Zero-halo padded input (conv1's padding=1) built in-kernel.
    xpad_scr[...] = jnp.zeros((Hp, Wp), jnp.float32)
    xpad_scr[1:1 + H, 1:1 + W] = x_ref[0]
    # Zero-halo buffer for the current channel plane (conv2's padding=1);
    # the ring stays zero — only the interior is rewritten per channel.
    hbuf_scr[...] = jnp.zeros((Hp, Wp), jnp.float32)

    a1 = a1_ref[0]
    a2 = a2_ref[0]

    def chan_body(c, accs):
        acc0, acc1, acc2 = accs

        # --- conv1 (1 -> channel c) + PReLU, 3 partial sums, ref-sliced taps ---
        hs = [jnp.full((H, W), b1_ref[c], jnp.float32),
              jnp.zeros((H, W), jnp.float32),
              jnp.zeros((H, W), jnp.float32)]
        for t in range(9):                              # static unroll over taps
            dy, dx = divmod(t, 3)
            hs[t % 3] = hs[t % 3] + xpad_scr[dy:dy + H, dx:dx + W] * w1_ref[t, c]
        h = (hs[0] + hs[1]) + hs[2]
        h = jnp.where(h >= 0.0, h, a1 * h)              # PReLU (shared scalar slope)
        hbuf_scr[1:1 + H, 1:1 + W] = h                  # interior only; ring stays 0

        # --- conv2 (channel c -> out), accumulate 9 taps into carried partials ---
        for t in range(9):
            dy, dx = divmod(t, 3)
            tap = hbuf_scr[dy:dy + H, dx:dx + W] * w2_ref[t, c]
            if t % 3 == 0:
                acc0 = acc0 + tap
            elif t % 3 == 1:
                acc1 = acc1 + tap
            else:
                acc2 = acc2 + tap
        return (acc0, acc1, acc2)

    init = (jnp.full((H, W), b2_ref[0], jnp.float32),
            jnp.zeros((H, W), jnp.float32),
            jnp.zeros((H, W), jnp.float32))
    acc0, acc1, acc2 = lax.fori_loop(0, C, chan_body, init, unroll=UNROLL)
    acc = (acc0 + acc1) + acc2
    o_ref[0] = jnp.where(acc >= 0.0, acc, a2 * acc)     # final PReLU


def rrdb_extra_forward(x_nhw, w1, b1, a1, w2, b2, a2):
    """x_nhw: (N, H, W) f32; w1/w2: (9, C); b1: (C,); a1/b2/a2: (1,)."""
    N, H, W = x_nhw.shape
    C = w1.shape[1]
    Hp, Wp = H + 2, W + 2
    smem = pl.BlockSpec(memory_space=pltpu.MemorySpace.SMEM)
    # working set: double-buffered in/out blocks, 2 scratch planes, ~8 live planes
    need = 4 * (2 * H * W + 2 * H * W + 2 * Hp * Wp + 8 * H * W)
    return pl.pallas_call(
        functools.partial(_rrdb_extra_kernel, H=H, W=W, C=C, UNROLL=4),
        out_shape=jax.ShapeDtypeStruct((N, H, W), jnp.float32),
        grid=(N,),
        in_specs=[pl.BlockSpec((1, H, W), lambda n: (n, 0, 0)),
                  smem, smem, smem, smem, smem, smem],
        out_specs=pl.BlockSpec((1, H, W), lambda n: (n, 0, 0)),
        scratch_shapes=[pltpu.VMEM((Hp, Wp), jnp.float32),
                        pltpu.VMEM((Hp, Wp), jnp.float32)],
        compiler_params=pltpu.CompilerParams(
            dimension_semantics=("parallel",),
            vmem_limit_bytes=_vmem_limit_bytes(need)),
    )(x_nhw, w1, b1, a1, w2, b2, a2)


# --------------------------------------------------------------------------
# Module port
# --------------------------------------------------------------------------
class ExtraLayer:
    """JAX/Pallas port of the PyTorch ExtraLayer module (synthetic weights)."""

    def __init__(self):
        self.extra = False
        self.mode = None

    def SRResNet(self, key=None):
        key = jax.random.PRNGKey(1) if key is None else key
        k1, k2 = jax.random.split(key)
        K = 9
        self.K = K
        self.w = jax.random.normal(k1, (K * K,), jnp.float32) * (2.0 / (K * K)) ** 0.5
        self.b = jax.random.normal(k2, (1,), jnp.float32) * 0.01
        self.extra = True
        self.mode = "conv1x"
        return self

    def SRDenseNet(self, key=None):
        key = jax.random.PRNGKey(2) if key is None else key
        k1, k2 = jax.random.split(key)
        K = 3
        self.K = K
        self.w = jax.random.normal(k1, (K * K,), jnp.float32) * (2.0 / (K * K)) ** 0.5
        self.b = jax.random.normal(k2, (1,), jnp.float32) * 0.01
        self.extra = True
        self.mode = "conv1x"
        return self

    def RRDBNet(self, key=None):
        key = jax.random.PRNGKey(3) if key is None else key
        k1, k2, k3, k4 = jax.random.split(key, 4)
        C = 64
        self.C = C
        self.w1 = jax.random.normal(k1, (9, C), jnp.float32) * (2.0 / 9.0) ** 0.5
        self.b1 = jax.random.normal(k2, (C,), jnp.float32) * 0.01
        self.a1 = jnp.full((1,), 0.25, jnp.float32)          # PReLU default slope
        self.w2 = jax.random.normal(k3, (9, C), jnp.float32) * (2.0 / (9.0 * C)) ** 0.5
        self.b2 = jax.random.normal(k4, (1,), jnp.float32) * 0.01
        self.a2 = jnp.full((1,), 0.25, jnp.float32)
        self.extra = True
        self.mode = "rrdb"
        return self

    def forward(self, x):
        """x: (N, 1, H, W) NCHW float32, matching the PyTorch module."""
        if not self.extra:
            return x
        x2 = x[:, 0, :, :].astype(jnp.float32)               # (N, H, W)
        if self.mode == "conv1x":
            y = conv_kk_1to1(x2, self.w, self.b, K=self.K)
        else:
            y = rrdb_extra_forward(x2, self.w1, self.b1, self.a1,
                                   self.w2, self.b2, self.a2)
        return y[:, None, :, :]                               # (N, 1, H, W)

    __call__ = forward

    # ---------------- pure-JAX reference (verification only) ----------------
    def reference(self, x):
        if not self.extra:
            return x
        if self.mode == "conv1x":
            K = self.K
            return _conv2d_ref(x, self.w.reshape(K, K, 1, 1), self.b, (K - 1) // 2)
        C = self.C
        h = _conv2d_ref(x, self.w1.reshape(3, 3, 1, C), self.b1, 1)
        h = jnp.where(h >= 0, h, self.a1[0] * h)
        y = _conv2d_ref(h, self.w2.reshape(3, 3, C)[..., None], self.b2, 1)
        return jnp.where(y >= 0, y, self.a2[0] * y)


def _conv2d_ref(x_nchw, w_hwio, b, pad):
    x = jnp.transpose(x_nchw, (0, 2, 3, 1))
    out = lax.conv_general_dilated(
        x, w_hwio, window_strides=(1, 1),
        padding=[(pad, pad), (pad, pad)],
        dimension_numbers=("NHWC", "HWIO", "NHWC"))
    out = out + b.reshape(1, 1, 1, -1)
    return jnp.transpose(out, (0, 3, 1, 2))


if __name__ == "__main__":
    key = jax.random.PRNGKey(0)
    kx, k1, k2, k3 = jax.random.split(key, 4)
    x = jax.random.normal(kx, (2, 1, 16, 16), jnp.float32)    # NCHW, single channel

    # 1) default ExtraLayer: identity forward
    base = ExtraLayer()
    out0 = jax.block_until_ready(base(x))
    assert out0.shape == x.shape and bool(jnp.allclose(out0, x))

    # 2) SRResNet head: Conv2d(1, 1, 9, padding=4)
    m1 = ExtraLayer().SRResNet(k1)
    out1 = jax.block_until_ready(jax.jit(m1.forward)(x))
    ref1 = m1.reference(x)
    assert out1.shape == (2, 1, 16, 16), out1.shape
    assert bool(jnp.allclose(out1, ref1, atol=1e-3, rtol=1e-3)), (
        float(jnp.max(jnp.abs(out1 - ref1))))

    # 3) SRDenseNet head: Conv2d(1, 1, 3, padding=1)
    m2 = ExtraLayer().SRDenseNet(k2)
    out2 = jax.block_until_ready(jax.jit(m2.forward)(x))
    ref2 = m2.reference(x)
    assert out2.shape == (2, 1, 16, 16), out2.shape
    assert bool(jnp.allclose(out2, ref2, atol=1e-3, rtol=1e-3)), (
        float(jnp.max(jnp.abs(out2 - ref2))))

    # 4) RRDBNet head: Conv(1->64) + PReLU + Conv(64->1) + PReLU (single fused kernel)
    m3 = ExtraLayer().RRDBNet(k3)
    out3 = jax.block_until_ready(jax.jit(m3.forward)(x))
    ref3 = m3.reference(x)
    assert out3.shape == (2, 1, 16, 16), out3.shape
    assert bool(jnp.allclose(out3, ref3, atol=1e-3, rtol=1e-3)), (
        float(jnp.max(jnp.abs(out3 - ref3))))

    print("KERNEL_OK")
</pallas_src>

<mosaic_0001>
module attributes {stable_mosaic.version = 11 : i64} {
  func.func @_conv_kk_1to1_kernel(%arg0: i32, %arg1: memref<1x16x16xf32, #tpu.memory_space<vmem>>, %arg2: memref<81xf32, #tpu.memory_space<smem>>, %arg3: memref<1xf32, #tpu.memory_space<smem>>, %arg4: memref<1x16x16xf32, #tpu.memory_space<vmem>>, %arg5: memref<24x24xf32, #tpu.memory_space<vmem>>) attributes {dimension_semantics = [#tpu.dimension_semantics<parallel>], iteration_bounds = array<i64: 2>, scalar_prefetch = 0 : i64, scratch_operands = 1 : i64, tpu.core_type = #tpu.core_type<tc>, window_params = [{transform_indices = @transform_0, window_bounds = array<i64: 1, 16, 16>}, {transform_indices = @transform_1, window_bounds = array<i64: 81>}, {transform_indices = @transform_2, window_bounds = array<i64: 1>}, {transform_indices = @transform_3, window_bounds = array<i64: 1, 16, 16>}]} {
    %cst = arith.constant 0.000000e+00 : f32
    %0 = vector.broadcast %cst : f32 to vector<24x24xf32>
    %c0 = arith.constant 0 : index
    %c0_0 = arith.constant 0 : index
    %1 = vector.load %arg5[%c0, %c0_0] : memref<24x24xf32, #tpu.memory_space<vmem>>, vector<24x24xf32>
    tpu.vector_store %arg5[%c0, %c0_0], %0 {strides = array<i32>} : memref<24x24xf32, #tpu.memory_space<vmem>>, vector<24x24xf32>,
    %c0_1 = arith.constant 0 : index
    %c0_2 = arith.constant 0 : index
    %c0_3 = arith.constant 0 : index
    %2 = vector.load %arg1[%c0_1, %c0_2, %c0_3] : memref<1x16x16xf32, #tpu.memory_space<vmem>>, vector<1x16x16xf32>
    %3 = vector.shape_cast %2 : vector<1x16x16xf32> to vector<16x16xf32>
    %c4 = arith.constant 4 : index
    %c4_4 = arith.constant 4 : index
    %4 = vector.load %arg5[%c4, %c4_4] : memref<24x24xf32, #tpu.memory_space<vmem>>, vector<16x16xf32>
    tpu.vector_store %arg5[%c4, %c4_4], %3 {strides = array<i32>} : memref<24x24xf32, #tpu.memory_space<vmem>>, vector<16x16xf32>,
    %cst_5 = arith.constant 0.000000e+00 : f32
    %5 = vector.broadcast %cst_5 : f32 to vector<16x16xf32>
    %cst_6 = arith.constant 0.000000e+00 : f32
    %6 = vector.broadcast %cst_6 : f32 to vector<16x16xf32>
    %cst_7 = arith.constant 0.000000e+00 : f32
    %7 = vector.broadcast %cst_7 : f32 to vector<16x16xf32>
    %c0_8 = arith.constant 0 : index
    %8 = memref.load %arg3[%c0_8] : memref<1xf32, #tpu.memory_space<smem>>
    %9 = vector.broadcast %8 : f32 to vector<16x16xf32>
    %c0_9 = arith.constant 0 : index
    %c0_10 = arith.constant 0 : index
    %10 = vector.load %arg5[%c0_9, %c0_10] : memref<24x24xf32, #tpu.memory_space<vmem>>, vector<16x16xf32>
    %c0_11 = arith.constant 0 : index
    %11 = memref.load %arg2[%c0_11] : memref<81xf32, #tpu.memory_space<smem>>
    %12 = vector.broadcast %11 : f32 to vector<16x16xf32>
    %13 = arith.mulf %10, %12 : vector<16x16xf32>
    %14 = arith.addf %9, %13 : vector<16x16xf32>
    %c0_12 = arith.constant 0 : index
    %c1 = arith.constant 1 : index
    %15 = vector.load %arg5[%c0_12, %c1] : memref<24x24xf32, #tpu.memory_space<vmem>>, vector<16x16xf32>
    %c1_13 = arith.constant 1 : index
    %16 = memref.load %arg2[%c1_13] : memref<81xf32, #tpu.memory_space<smem>>
    %17 = vector.broadcast %16 : f32 to vector<16x16xf32>
    %18 = arith.mulf %15, %17 : vector<16x16xf32>
    %19 = arith.addf %5, %18 : vector<16x16xf32>
    %c0_14 = arith.constant 0 : index
    %c2 = arith.constant 2 : index
    %20 = vector.load %arg5[%c0_14, %c2] : memref<24x24xf32, #tpu.memory_space<vmem>>, vector<16x16xf32>
    %c2_15 = arith.constant 2 : index
    %21 = memref.load %arg2[%c2_15] : memref<81xf32, #tpu.memory_space<smem>>
    %22 = vector.broadcast %21 : f32 to vector<16x16xf32>
    %23 = arith.mulf %20, %22 : vector<16x16xf32>
    %24 = arith.addf %6, %23 : vector<16x16xf32>
    %c0_16 = arith.constant 0 : index
    %c3 = arith.constant 3 : index
    %25 = vector.load %arg5[%c0_16, %c3] : memref<24x24xf32, #tpu.memory_space<vmem>>, vector<16x16xf32>
    %c3_17 = arith.constant 3 : index
    %26 = memref.load %arg2[%c3_17] : memref<81xf32, #tpu.memory_space<smem>>
    %27 = vector.broadcast %26 : f32 to vector<16x16xf32>
    %28 = arith.mulf %25, %27 : vector<16x16xf32>
    %29 = arith.addf %7, %28 : vector<16x16xf32>
    %c0_18 = arith.constant 0 : index
    %c4_19 = arith.constant 4 : index
    %30 = vector.load %arg5[%c0_18, %c4_19] : memref<24x24xf32, #tpu.memory_space<vmem>>, vector<16x16xf32>
    %c4_20 = arith.constant 4 : index
    %31 = memref.load %arg2[%c4_20] : memref<81xf32, #tpu.memory_space<smem>>
    %32 = vector.broadcast %31 : f32 to vector<16x16xf32>
    %33 = arith.mulf %30, %32 : vector<16x16xf32>
    %34 = arith.addf %14, %33 : vector<16x16xf32>
    %c0_21 = arith.constant 0 : index
    %c5 = arith.constant 5 : index
    %35 = vector.load %arg5[%c0_21, %c5] : memref<24x24xf32, #tpu.memory_space<vmem>>, vector<16x16xf32>
    %c5_22 = arith.constant 5 : index
    %36 = memref.load %arg2[%c5_22] : memref<81xf32, #tpu.memory_space<smem>>
    %37 = vector.broadcast %36 : f32 to vector<16x16xf32>
    %38 = arith.mulf %35, %37 : vector<16x16xf32>
    %39 = arith.addf %19, %38 : vector<16x16xf32>
    %c0_23 = arith.constant 0 : index
    %c6 = arith.constant 6 : index
    %40 = vector.load %arg5[%c0_23, %c6] : memref<24x24xf32, #tpu.memory_space<vmem>>, vector<16x16xf32>
    %c6_24 = arith.constant 6 : index
    %41 = memref.load %arg2[%c6_24] : memref<81xf32, #tpu.memory_space<smem>>
    %42 = vector.broadcast %41 : f32 to vector<16x16xf32>
    %43 = arith.mulf %40, %42 : vector<16x16xf32>
    %44 = arith.addf %24, %43 : vector<16x16xf32>
    %c0_25 = arith.constant 0 : index
    %c7 = arith.constant 7 : index
    %45 = vector.load %arg5[%c0_25, %c7] : memref<24x24xf32, #tpu.memory_space<vmem>>, vector<16x16xf32>
    %c7_26 = arith.constant 7 : index
    %46 = memref.load %arg2[%c7_26] : memref<81xf32, #tpu.memory_space<smem>>
    %47 = vector.broadcast %46 : f32 to vector<16x16xf32>
    %48 = arith.mulf %45, %47 : vector<16x16xf32>
    %49 = arith.addf %29, %48 : vector<16x16xf32>
    %c0_27 = arith.constant 0 : index
    %c8 = arith.constant 8 : index
    %50 = vector.load %arg5[%c0_27, %c8] : memref<24x24xf32, #tpu.memory_space<vmem>>, vector<16x16xf32>
    %c8_28 = arith.constant 8 : index
    %51 = memref.load %arg2[%c8_28] : memref<81xf32, #tpu.memory_space<smem>>
    %52 = vector.broadcast %51 : f32 to vector<16x16xf32>
    %53 = arith.mulf %50, %52 : vector<16x16xf32>
    %54 = arith.addf %34, %53 : vector<16x16xf32>
    %c1_29 = arith.constant 1 : index
    %c0_30 = arith.constant 0 : index
    %55 = vector.load %arg5[%c1_29, %c0_30] : memref<24x24xf32, #tpu.memory_space<vmem>>, vector<16x16xf32>
    %c9 = arith.constant 9 : index
    %56 = memref.load %arg2[%c9] : memref<81xf32, #tpu.memory_space<smem>>
    %57 = vector.broadcast %56 : f32 to vector<16x16xf32>
    %58 = arith.mulf %55, %57 : vector<16x16xf32>
    %59 = arith.addf %39, %58 : vector<16x16xf32>
    %c1_31 = arith.constant 1 : index
    %c1_32 = arith.constant 1 : index
    %60 = vector.load %arg5[%c1_31, %c1_32] : memref<24x24xf32, #tpu.memory_space<vmem>>, vector<16x16xf32>
    %c10 = arith.constant 10 : index
    %61 = memref.load %arg2[%c10] : memref<81xf32, #tpu.memory_space<smem>>
    %62 = vector.broadcast %61 : f32 to vector<16x16xf32>
    %63 = arith.mulf %60, %62 : vector<16x16xf32>
    %64 = arith.addf %44, %63 : vector<16x16xf32>
    %c1_33 = arith.constant 1 : index
    %c2_34 = arith.constant 2 : index
    %65 = vector.load %arg5[%c1_33, %c2_34] : memref<24x24xf32, #tpu.memory_space<vmem>>, vector<16x16xf32>
    %c11 = arith.constant 11 : index
    %66 = memref.load %arg2[%c11] : memref<81xf32, #tpu.memory_space<smem>>
    %67 = vector.broadcast %66 : f32 to vector<16x16xf32>
    %68 = arith.mulf %65, %67 : vector<16x16xf32>
    %69 = arith.addf %49, %68 : vector<16x16xf32>
    %c1_35 = arith.constant 1 : index
    %c3_36 = arith.constant 3 : index
    %70 = vector.load %arg5[%c1_35, %c3_36] : memref<24x24xf32, #tpu.memory_space<vmem>>, vector<16x16xf32>
    %c12 = arith.constant 12 : index
    %71 = memref.load %arg2[%c12] : memref<81xf32, #tpu.memory_space<smem>>
    %72 = vector.broadcast %71 : f32 to vector<16x16xf32>
    %73 = arith.mulf %70, %72 : vector<16x16xf32>
    %74 = arith.addf %54, %73 : vector<16x16xf32>
    %c1_37 = arith.constant 1 : index
    %c4_38 = arith.constant 4 : index
    %75 = vector.load %arg5[%c1_37, %c4_38] : memref<24x24xf32, #tpu.memory_space<vmem>>, vector<16x16xf32>
    %c13 = arith.constant 13 : index
    %76 = memref.load %arg2[%c13] : memref<81xf32, #tpu.memory_space<smem>>
    %77 = vector.broadcast %76 : f32 to vector<16x16xf32>
    %78 = arith.mulf %75, %77 : vector<16x16xf32>
    %79 = arith.addf %59, %78 : vector<16x16xf32>
    %c1_39 = arith.constant 1 : index
    %c5_40 = arith.constant 5 : index
    %80 = vector.load %arg5[%c1_39, %c5_40] : memref<24x24xf32, #tpu.memory_space<vmem>>, vector<16x16xf32>
    %c14 = arith.constant 14 : index
    %81 = memref.load %arg2[%c14] : memref<81xf32, #tpu.memory_space<smem>>
    %82 = vector.broadcast %81 : f32 to vector<16x16xf32>
    %83 = arith.mulf %80, %82 : vector<16x16xf32>
    %84 = arith.addf %64, %83 : vector<16x16xf32>
    %c1_41 = arith.constant 1 : index
    %c6_42 = arith.constant 6 : index
    %85 = vector.load %arg5[%c1_41, %c6_42] : memref<24x24xf32, #tpu.memory_space<vmem>>, vector<16x16xf32>
    %c15 = arith.constant 15 : index
    %86 = memref.load %arg2[%c15] : memref<81xf32, #tpu.memory_space<smem>>
    %87 = vector.broadcast %86 : f32 to vector<16x16xf32>
    %88 = arith.mulf %85, %87 : vector<16x16xf32>
    %89 = arith.addf %69, %88 : vector<16x16xf32>
    %c1_43 = arith.constant 1 : index
    %c7_44 = arith.constant 7 : index
    %90 = vector.load %arg5[%c1_43, %c7_44] : memref<24x24xf32, #tpu.memory_space<vmem>>, vector<16x16xf32>
    %c16 = arith.constant 16 : index
    %91 = memref.load %arg2[%c16] : memref<81xf32, #tpu.memory_space<smem>>
    %92 = vector.broadcast %91 : f32 to vector<16x16xf32>
    %93 = arith.mulf %90, %92 : vector<16x16xf32>
    %94 = arith.addf %74, %93 : vector<16x16xf32>
    %c1_45 = arith.constant 1 : index
    %c8_46 = arith.constant 8 : index
    %95 = vector.load %arg5[%c1_45, %c8_46] : memref<24x24xf32, #tpu.memory_space<vmem>>, vector<16x16xf32>
    %c17 = arith.constant 17 : index
    %96 = memref.load %arg2[%c17] : memref<81xf32, #tpu.memory_space<smem>>
    %97 = vector.broadcast %96 : f32 to vector<16x16xf32>
    %98 = arith.mulf %95, %97 : vector<16x16xf32>
    %99 = arith.addf %79, %98 : vector<16x16xf32>
    %c2_47 = arith.constant 2 : index
    %c0_48 = arith.constant 0 : index
    %100 = vector.load %arg5[%c2_47, %c0_48] : memref<24x24xf32, #tpu.memory_space<vmem>>, vector<16x16xf32>
    %c18 = arith.constant 18 : index
    %101 = memref.load %arg2[%c18] : memref<81xf32, #tpu.memory_space<smem>>
    %102 = vector.broadcast %101 : f32 to vector<16x16xf32>
    %103 = arith.mulf %100, %102 : vector<16x16xf32>
    %104 = arith.addf %84, %103 : vector<16x16xf32>
    %c2_49 = arith.constant 2 : index
    %c1_50 = arith.constant 1 : index
    %105 = vector.load %arg5[%c2_49, %c1_50] : memref<24x24xf32, #tpu.memory_space<vmem>>, vector<16x16xf32>
    %c19 = arith.constant 19 : index
    %106 = memref.load %arg2[%c19] : memref<81xf32, #tpu.memory_space<smem>>
    %107 = vector.broadcast %106 : f32 to vector<16x16xf32>
    %108 = arith.mulf %105, %107 : vector<16x16xf32>
    %109 = arith.addf %89, %108 : vector<16x16xf32>
    %c2_51 = arith.constant 2 : index
    %c2_52 = arith.constant 2 : index
    %110 = vector.load %arg5[%c2_51, %c2_52] : memref<24x24xf32, #tpu.memory_space<vmem>>, vector<16x16xf32>
    %c20 = arith.constant 20 : index
    %111 = memref.load %arg2[%c20] : memref<81xf32, #tpu.memory_space<smem>>
    %112 = vector.broadcast %111 : f32 to vector<16x16xf32>
    %113 = arith.mulf %110, %112 : vector<16x16xf32>
    %114 = arith.addf %94, %113 : vector<16x16xf32>
    %c2_53 = arith.constant 2 : index
    %c3_54 = arith.constant 3 : index
    %115 = vector.load %arg5[%c2_53, %c3_54] : memref<24x24xf32, #tpu.memory_space<vmem>>, vector<16x16xf32>
    %c21 = arith.constant 21 : index
    %116 = memref.load %arg2[%c21] : memref<81xf32, #tpu.memory_space<smem>>
    %117 = vector.broadcast %116 : f32 to vector<16x16xf32>
    %118 = arith.mulf %115, %117 : vector<16x16xf32>
    %119 = arith.addf %99, %118 : vector<16x16xf32>
    %c2_55 = arith.constant 2 : index
    %c4_56 = arith.constant 4 : index
    %120 = vector.load %arg5[%c2_55, %c4_56] : memref<24x24xf32, #tpu.memory_space<vmem>>, vector<16x16xf32>
    %c22 = arith.constant 22 : index
    %121 = memref.load %arg2[%c22] : memref<81xf32, #tpu.memory_space<smem>>
    %122 = vector.broadcast %121 : f32 to vector<16x16xf32>
    %123 = arith.mulf %120, %122 : vector<16x16xf32>
    %124 = arith.addf %104, %123 : vector<16x16xf32>
    %c2_57 = arith.constant 2 : index
    %c5_58 = arith.constant 5 : index
    %125 = vector.load %arg5[%c2_57, %c5_58] : memref<24x24xf32, #tpu.memory_space<vmem>>, vector<16x16xf32>
    %c23 = arith.constant 23 : index
    %126 = memref.load %arg2[%c23] : memref<81xf32, #tpu.memory_space<smem>>
    %127 = vector.broadcast %126 : f32 to vector<16x16xf32>
    %128 = arith.mulf %125, %127 : vector<16x16xf32>
    %129 = arith.addf %109, %128 : vector<16x16xf32>
    %c2_59 = arith.constant 2 : index
    %c6_60 = arith.constant 6 : index
    %130 = vector.load %arg5[%c2_59, %c6_60] : memref<24x24xf32, #tpu.memory_space<vmem>>, vector<16x16xf32>
    %c24 = arith.constant 24 : index
    %131 = memref.load %arg2[%c24] : memref<81xf32, #tpu.memory_space<smem>>
    %132 = vector.broadcast %131 : f32 to vector<16x16xf32>
    %133 = arith.mulf %130, %132 : vector<16x16xf32>
    %134 = arith.addf %114, %133 : vector<16x16xf32>
    %c2_61 = arith.constant 2 : index
    %c7_62 = arith.constant 7 : index
    %135 = vector.load %arg5[%c2_61, %c7_62] : memref<24x24xf32, #tpu.memory_space<vmem>>, vector<16x16xf32>
    %c25 = arith.constant 25 : index
    %136 = memref.load %arg2[%c25] : memref<81xf32, #tpu.memory_space<smem>>
    %137 = vector.broadcast %136 : f32 to vector<16x16xf32>
    %138 = arith.mulf %135, %137 : vector<16x16xf32>
    %139 = arith.addf %119, %138 : vector<16x16xf32>
    %c2_63 = arith.constant 2 : index
    %c8_64 = arith.constant 8 : index
    %140 = vector.load %arg5[%c2_63, %c8_64] : memref<24x24xf32, #tpu.memory_space<vmem>>, vector<16x16xf32>
    %c26 = arith.constant 26 : index
    %141 = memref.load %arg2[%c26] : memref<81xf32, #tpu.memory_space<smem>>
    %142 = vector.broadcast %141 : f32 to vector<16x16xf32>
    %143 = arith.mulf %140, %142 : vector<16x16xf32>
    %144 = arith.addf %124, %143 : vector<16x16xf32>
    %c3_65 = arith.constant 3 : index
    %c0_66 = arith.constant 0 : index
    %145 = vector.load %arg5[%c3_65, %c0_66] : memref<24x24xf32, #tpu.memory_space<vmem>>, vector<16x16xf32>
    %c27 = arith.constant 27 : index
    %146 = memref.load %arg2[%c27] : memref<81xf32, #tpu.memory_space<smem>>
    %147 = vector.broadcast %146 : f32 to vector<16x16xf32>
    %148 = arith.mulf %145, %147 : vector<16x16xf32>
    %149 = arith.addf %129, %148 : vector<16x16xf32>
    %c3_67 = arith.constant 3 : index
    %c1_68 = arith.constant 1 : index
    %150 = vector.load %arg5[%c3_67, %c1_68] : memref<24x24xf32, #tpu.memory_space<vmem>>, vector<16x16xf32>
    %c28 = arith.constant 28 : index
    %151 = memref.load %arg2[%c28] : memref<81xf32, #tpu.memory_space<smem>>
    %152 = vector.broadcast %151 : f32 to vector<16x16xf32>
    %153 = arith.mulf %150, %152 : vector<16x16xf32>
    %154 = arith.addf %134, %153 : vector<16x16xf32>
    %c3_69 = arith.constant 3 : index
    %c2_70 = arith.constant 2 : index
    %155 = vector.load %arg5[%c3_69, %c2_70] : memref<24x24xf32, #tpu.memory_space<vmem>>, vector<16x16xf32>
    %c29 = arith.constant 29 : index
    %156 = memref.load %arg2[%c29] : memref<81xf32, #tpu.memory_space<smem>>
    %157 = vector.broadcast %156 : f32 to vector<16x16xf32>
    %158 = arith.mulf %155, %157 : vector<16x16xf32>
    %159 = arith.addf %139, %158 : vector<16x16xf32>
    %c3_71 = arith.constant 3 : index
    %c3_72 = arith.constant 3 : index
    %160 = vector.load %arg5[%c3_71, %c3_72] : memref<24x24xf32, #tpu.memory_space<vmem>>, vector<16x16xf32>
    %c30 = arith.constant 30 : index
    %161 = memref.load %arg2[%c30] : memref<81xf32, #tpu.memory_space<smem>>
    %162 = vector.broadcast %161 : f32 to vector<16x16xf32>
    %163 = arith.mulf %160, %162 : vector<16x16xf32>
    %164 = arith.addf %144, %163 : vector<16x16xf32>
    %c3_73 = arith.constant 3 : index
    %c4_74 = arith.constant 4 : index
    %165 = vector.load %arg5[%c3_73, %c4_74] : memref<24x24xf32, #tpu.memory_space<vmem>>, vector<16x16xf32>
    %c31 = arith.constant 31 : index
    %166 = memref.load %arg2[%c31] : memref<81xf32, #tpu.memory_space<smem>>
    %167 = vector.broadcast %166 : f32 to vector<16x16xf32>
    %168 = arith.mulf %165, %167 : vector<16x16xf32>
    %169 = arith.addf %149, %168 : vector<16x16xf32>
    %c3_75 = arith.constant 3 : index
    %c5_76 = arith.constant 5 : index
    %170 = vector.load %arg5[%c3_75, %c5_76] : memref<24x24xf32, #tpu.memory_space<vmem>>, vector<16x16xf32>
    %c32 = arith.constant 32 : index
    %171 = memref.load %arg2[%c32] : memref<81xf32, #tpu.memory_space<smem>>
    %172 = vector.broadcast %171 : f32 to vector<16x16xf32>
    %173 = arith.mulf %170, %172 : vector<16x16xf32>
    %174 = arith.addf %154, %173 : vector<16x16xf32>
    %c3_77 = arith.constant 3 : index
    %c6_78 = arith.constant 6 : index
    %175 = vector.load %arg5[%c3_77, %c6_78] : memref<24x24xf32, #tpu.memory_space<vmem>>, vector<16x16xf32>
    %c33 = arith.constant 33 : index
    %176 = memref.load %arg2[%c33] : memref<81xf32, #tpu.memory_space<smem>>
    %177 = vector.broadcast %176 : f32 to vector<16x16xf32>
    %178 = arith.mulf %175, %177 : vector<16x16xf32>
    %179 = arith.addf %159, %178 : vector<16x16xf32>
    %c3_79 = arith.constant 3 : index
    %c7_80 = arith.constant 7 : index
    %180 = vector.load %arg5[%c3_79, %c7_80] : memref<24x24xf32, #tpu.memory_space<vmem>>, vector<16x16xf32>
    %c34 = arith.constant 34 : index
    %181 = memref.load %arg2[%c34] : memref<81xf32, #tpu.memory_space<smem>>
    %182 = vector.broadcast %181 : f32 to vector<16x16xf32>
    %183 = arith.mulf %180, %182 : vector<16x16xf32>
    %184 = arith.addf %164, %183 : vector<16x16xf32>
    %c3_81 = arith.constant 3 : index
    %c8_82 = arith.constant 8 : index
    %185 = vector.load %arg5[%c3_81, %c8_82] : memref<24x24xf32, #tpu.memory_space<vmem>>, vector<16x16xf32>
    %c35 = arith.constant 35 : index
    %186 = memref.load %arg2[%c35] : memref<81xf32, #tpu.memory_space<smem>>
    %187 = vector.broadcast %186 : f32 to vector<16x16xf32>
    %188 = arith.mulf %185, %187 : vector<16x16xf32>
    %189 = arith.addf %169, %188 : vector<16x16xf32>
    %c4_83 = arith.constant 4 : index
    %c0_84 = arith.constant 0 : index
    %190 = vector.load %arg5[%c4_83, %c0_84] : memref<24x24xf32, #tpu.memory_space<vmem>>, vector<16x16xf32>
    %c36 = arith.constant 36 : index
    %191 = memref.load %arg2[%c36] : memref<81xf32, #tpu.memory_space<smem>>
    %192 = vector.broadcast %191 : f32 to vector<16x16xf32>
    %193 = arith.mulf %190, %192 : vector<16x16xf32>
    %194 = arith.addf %174, %193 : vector<16x16xf32>
    %c4_85 = arith.constant 4 : index
    %c1_86 = arith.constant 1 : index
    %195 = vector.load %arg5[%c4_85, %c1_86] : memref<24x24xf32, #tpu.memory_space<vmem>>, vector<16x16xf32>
    %c37 = arith.constant 37 : index
    %196 = memref.load %arg2[%c37] : memref<81xf32, #tpu.memory_space<smem>>
    %197 = vector.broadcast %196 : f32 to vector<16x16xf32>
    %198 = arith.mulf %195, %197 : vector<16x16xf32>
    %199 = arith.addf %179, %198 : vector<16x16xf32>
    %c4_87 = arith.constant 4 : index
    %c2_88 = arith.constant 2 : index
    %200 = vector.load %arg5[%c4_87, %c2_88] : memref<24x24xf32, #tpu.memory_space<vmem>>, vector<16x16xf32>
    %c38 = arith.constant 38 : index
    %201 = memref.load %arg2[%c38] : memref<81xf32, #tpu.memory_space<smem>>
    %202 = vector.broadcast %201 : f32 to vector<16x16xf32>
    %203 = arith.mulf %200, %202 : vector<16x16xf32>
    %204 = arith.addf %184, %203 : vector<16x16xf32>
    %c4_89 = arith.constant 4 : index
    %c3_90 = arith.constant 3 : index
    %205 = vector.load %arg5[%c4_89, %c3_90] : memref<24x24xf32, #tpu.memory_space<vmem>>, vector<16x16xf32>
    %c39 = arith.constant 39 : index
    %206 = memref.load %arg2[%c39] : memref<81xf32, #tpu.memory_space<smem>>
    %207 = vector.broadcast %206 : f32 to vector<16x16xf32>
    %208 = arith.mulf %205, %207 : vector<16x16xf32>
    %209 = arith.addf %189, %208 : vector<16x16xf32>
    %c4_91 = arith.constant 4 : index
    %c4_92 = arith.constant 4 : index
    %210 = vector.load %arg5[%c4_91, %c4_92] : memref<24x24xf32, #tpu.memory_space<vmem>>, vector<16x16xf32>
    %c40 = arith.constant 40 : index
    %211 = memref.load %arg2[%c40] : memref<81xf32, #tpu.memory_space<smem>>
    %212 = vector.broadcast %211 : f32 to vector<16x16xf32>
    %213 = arith.mulf %210, %212 : vector<16x16xf32>
    %214 = arith.addf %194, %213 : vector<16x16xf32>
    %c4_93 = arith.constant 4 : index
    %c5_94 = arith.constant 5 : index
    %215 = vector.load %arg5[%c4_93, %c5_94] : memref<24x24xf32, #tpu.memory_space<vmem>>, vector<16x16xf32>
    %c41 = arith.constant 41 : index
    %216 = memref.load %arg2[%c41] : memref<81xf32, #tpu.memory_space<smem>>
    %217 = vector.broadcast %216 : f32 to vector<16x16xf32>
    %218 = arith.mulf %215, %217 : vector<16x16xf32>
    %219 = arith.addf %199, %218 : vector<16x16xf32>
    %c4_95 = arith.constant 4 : index
    %c6_96 = arith.constant 6 : index
    %220 = vector.load %arg5[%c4_95, %c6_96] : memref<24x24xf32, #tpu.memory_space<vmem>>, vector<16x16xf32>
    %c42 = arith.constant 42 : index
    %221 = memref.load %arg2[%c42] : memref<81xf32, #tpu.memory_space<smem>>
    %222 = vector.broadcast %221 : f32 to vector<16x16xf32>
    %223 = arith.mulf %220, %222 : vector<16x16xf32>
    %224 = arith.addf %204, %223 : vector<16x16xf32>
    %c4_97 = arith.constant 4 : index
    %c7_98 = arith.constant 7 : index
    %225 = vector.load %arg5[%c4_97, %c7_98] : memref<24x24xf32, #tpu.memory_space<vmem>>, vector<16x16xf32>
    %c43 = arith.constant 43 : index
    %226 = memref.load %arg2[%c43] : memref<81xf32, #tpu.memory_space<smem>>
    %227 = vector.broadcast %226 : f32 to vector<16x16xf32>
    %228 = arith.mulf %225, %227 : vector<16x16xf32>
    %229 = arith.addf %209, %228 : vector<16x16xf32>
    %c4_99 = arith.constant 4 : index
    %c8_100 = arith.constant 8 : index
    %230 = vector.load %arg5[%c4_99, %c8_100] : memref<24x24xf32, #tpu.memory_space<vmem>>, vector<16x16xf32>
    %c44 = arith.constant 44 : index
    %231 = memref.load %arg2[%c44] : memref<81xf32, #tpu.memory_space<smem>>
    %232 = vector.broadcast %231 : f32 to vector<16x16xf32>
    %233 = arith.mulf %230, %232 : vector<16x16xf32>
    %234 = arith.addf %214, %233 : vector<16x16xf32>
    %c5_101 = arith.constant 5 : index
    %c0_102 = arith.constant 0 : index
    %235 = vector.load %arg5[%c5_101, %c0_102] : memref<24x24xf32, #tpu.memory_space<vmem>>, vector<16x16xf32>
    %c45 = arith.constant 45 : index
    %236 = memref.load %arg2[%c45] : memref<81xf32, #tpu.memory_space<smem>>
    %237 = vector.broadcast %236 : f32 to vector<16x16xf32>
    %238 = arith.mulf %235, %237 : vector<16x16xf32>
    %239 = arith.addf %219, %238 : vector<16x16xf32>
    %c5_103 = arith.constant 5 : index
    %c1_104 = arith.constant 1 : index
    %240 = vector.load %arg5[%c5_103, %c1_104] : memref<24x24xf32, #tpu.memory_space<vmem>>, vector<16x16xf32>
    %c46 = arith.constant 46 : index
    %241 = memref.load %arg2[%c46] : memref<81xf32, #tpu.memory_space<smem>>
    %242 = vector.broadcast %241 : f32 to vector<16x16xf32>
    %243 = arith.mulf %240, %242 : vector<16x16xf32>
    %244 = arith.addf %224, %243 : vector<16x16xf32>
    %c5_105 = arith.constant 5 : index
    %c2_106 = arith.constant 2 : index
    %245 = vector.load %arg5[%c5_105, %c2_106] : memref<24x24xf32, #tpu.memory_space<vmem>>, vector<16x16xf32>
    %c47 = arith.constant 47 : index
    %246 = memref.load %arg2[%c47] : memref<81xf32, #tpu.memory_space<smem>>
    %247 = vector.broadcast %246 : f32 to vector<16x16xf32>
    %248 = arith.mulf %245, %247 : vector<16x16xf32>
    %249 = arith.addf %229, %248 : vector<16x16xf32>
    %c5_107 = arith.constant 5 : index
    %c3_108 = arith.constant 3 : index
    %250 = vector.load %arg5[%c5_107, %c3_108] : memref<24x24xf32, #tpu.memory_space<vmem>>, vector<16x16xf32>
    %c48 = arith.constant 48 : index
    %251 = memref.load %arg2[%c48] : memref<81xf32, #tpu.memory_space<smem>>
    %252 = vector.broadcast %251 : f32 to vector<16x16xf32>
    %253 = arith.mulf %250, %252 : vector<16x16xf32>
    %254 = arith.addf %234, %253 : vector<16x16xf32>
    %c5_109 = arith.constant 5 : index
    %c4_110 = arith.constant 4 : index
    %255 = vector.load %arg5[%c5_109, %c4_110] : memref<24x24xf32, #tpu.memory_space<vmem>>, vector<16x16xf32>
    %c49 = arith.constant 49 : index
    %256 = memref.load %arg2[%c49] : memref<81xf32, #tpu.memory_space<smem>>
    %257 = vector.broadcast %256 : f32 to vector<16x16xf32>
    %258 = arith.mulf %255, %257 : vector<16x16xf32>
    %259 = arith.addf %239, %258 : vector<16x16xf32>
    %c5_111 = arith.constant 5 : index
    %c5_112 = arith.constant 5 : index
    %260 = vector.load %arg5[%c5_111, %c5_112] : memref<24x24xf32, #tpu.memory_space<vmem>>, vector<16x16xf32>
    %c50 = arith.constant 50 : index
    %261 = memref.load %arg2[%c50] : memref<81xf32, #tpu.memory_space<smem>>
    %262 = vector.broadcast %261 : f32 to vector<16x16xf32>
    %263 = arith.mulf %260, %262 : vector<16x16xf32>
    %264 = arith.addf %244, %263 : vector<16x16xf32>
    %c5_113 = arith.constant 5 : index
    %c6_114 = arith.constant 6 : index
    %265 = vector.load %arg5[%c5_113, %c6_114] : memref<24x24xf32, #tpu.memory_space<vmem>>, vector<16x16xf32>
    %c51 = arith.constant 51 : index
    %266 = memref.load %arg2[%c51] : memref<81xf32, #tpu.memory_space<smem>>
    %267 = vector.broadcast %266 : f32 to vector<16x16xf32>
    %268 = arith.mulf %265, %267 : vector<16x16xf32>
    %269 = arith.addf %249, %268 : vector<16x16xf32>
    %c5_115 = arith.constant 5 : index
    %c7_116 = arith.constant 7 : index
    %270 = vector.load %arg5[%c5_115, %c7_116] : memref<24x24xf32, #tpu.memory_space<vmem>>, vector<16x16xf32>
    %c52 = arith.constant 52 : index
    %271 = memref.load %arg2[%c52] : memref<81xf32, #tpu.memory_space<smem>>
    %272 = vector.broadcast %271 : f32 to vector<16x16xf32>
    %273 = arith.mulf %270, %272 : vector<16x16xf32>
    %274 = arith.addf %254, %273 : vector<16x16xf32>
    %c5_117 = arith.constant 5 : index
    %c8_118 = arith.constant 8 : index
    %275 = vector.load %arg5[%c5_117, %c8_118] : memref<24x24xf32, #tpu.memory_space<vmem>>, vector<16x16xf32>
    %c53 = arith.constant 53 : index
    %276 = memref.load %arg2[%c53] : memref<81xf32, #tpu.memory_space<smem>>
    %277 = vector.broadcast %276 : f32 to vector<16x16xf32>
    %278 = arith.mulf %275, %277 : vector<16x16xf32>
    %279 = arith.addf %259, %278 : vector<16x16xf32>
    %c6_119 = arith.constant 6 : index
    %c0_120 = arith.constant 0 : index
    %280 = vector.load %arg5[%c6_119, %c0_120] : memref<24x24xf32, #tpu.memory_space<vmem>>, vector<16x16xf32>
    %c54 = arith.constant 54 : index
    %281 = memref.load %arg2[%c54] : memref<81xf32, #tpu.memory_space<smem>>
    %282 = vector.broadcast %281 : f32 to vector<16x16xf32>
    %283 = arith.mulf %280, %282 : vector<16x16xf32>
    %284 = arith.addf %264, %283 : vector<16x16xf32>
    %c6_121 = arith.constant 6 : index
    %c1_122 = arith.constant 1 : index
    %285 = vector.load %arg5[%c6_121, %c1_122] : memref<24x24xf32, #tpu.memory_space<vmem>>, vector<16x16xf32>
    %c55 = arith.constant 55 : index
    %286 = memref.load %arg2[%c55] : memref<81xf32, #tpu.memory_space<smem>>
    %287 = vector.broadcast %286 : f32 to vector<16x16xf32>
    %288 = arith.mulf %285, %287 : vector<16x16xf32>
    %289 = arith.addf %269, %288 : vector<16x16xf32>
    %c6_123 = arith.constant 6 : index
    %c2_124 = arith.constant 2 : index
    %290 = vector.load %arg5[%c6_123, %c2_124] : memref<24x24xf32, #tpu.memory_space<vmem>>, vector<16x16xf32>
    %c56 = arith.constant 56 : index
    %291 = memref.load %arg2[%c56] : memref<81xf32, #tpu.memory_space<smem>>
    %292 = vector.broadcast %291 : f32 to vector<16x16xf32>
    %293 = arith.mulf %290, %292 : vector<16x16xf32>
    %294 = arith.addf %274, %293 : vector<16x16xf32>
    %c6_125 = arith.constant 6 : index
    %c3_126 = arith.constant 3 : index
    %295 = vector.load %arg5[%c6_125, %c3_126] : memref<24x24xf32, #tpu.memory_space<vmem>>, vector<16x16xf32>
    %c57 = arith.constant 57 : index
    %296 = memref.load %arg2[%c57] : memref<81xf32, #tpu.memory_space<smem>>
    %297 = vector.broadcast %296 : f32 to vector<16x16xf32>
    %298 = arith.mulf %295, %297 : vector<16x16xf32>
    %299 = arith.addf %279, %298 : vector<16x16xf32>
    %c6_127 = arith.constant 6 : index
    %c4_128 = arith.constant 4 : index
    %300 = vector.load %arg5[%c6_127, %c4_128] : memref<24x24xf32, #tpu.memory_space<vmem>>, vector<16x16xf32>
    %c58 = arith.constant 58 : index
    %301 = memref.load %arg2[%c58] : memref<81xf32, #tpu.memory_space<smem>>
    %302 = vector.broadcast %301 : f32 to vector<16x16xf32>
    %303 = arith.mulf %300, %302 : vector<16x16xf32>
    %304 = arith.addf %284, %303 : vector<16x16xf32>
    %c6_129 = arith.constant 6 : index
    %c5_130 = arith.constant 5 : index
    %305 = vector.load %arg5[%c6_129, %c5_130] : memref<24x24xf32, #tpu.memory_space<vmem>>, vector<16x16xf32>
    %c59 = arith.constant 59 : index
    %306 = memref.load %arg2[%c59] : memref<81xf32, #tpu.memory_space<smem>>
    %307 = vector.broadcast %306 : f32 to vector<16x16xf32>
    %308 = arith.mulf %305, %307 : vector<16x16xf32>
    %309 = arith.addf %289, %308 : vector<16x16xf32>
    %c6_131 = arith.constant 6 : index
    %c6_132 = arith.constant 6 : index
    %310 = vector.load %arg5[%c6_131, %c6_132] : memref<24x24xf32, #tpu.memory_space<vmem>>, vector<16x16xf32>
    %c60 = arith.constant 60 : index
    %311 = memref.load %arg2[%c60] : memref<81xf32, #tpu.memory_space<smem>>
    %312 = vector.broadcast %311 : f32 to vector<16x16xf32>
    %313 = arith.mulf %310, %312 : vector<16x16xf32>
    %314 = arith.addf %294, %313 : vector<16x16xf32>
    %c6_133 = arith.constant 6 : index
    %c7_134 = arith.constant 7 : index
    %315 = vector.load %arg5[%c6_133, %c7_134] : memref<24x24xf32, #tpu.memory_space<vmem>>, vector<16x16xf32>
    %c61 = arith.constant 61 : index
    %316 = memref.load %arg2[%c61] : memref<81xf32, #tpu.memory_space<smem>>
    %317 = vector.broadcast %316 : f32 to vector<16x16xf32>
    %318 = arith.mulf %315, %317 : vector<16x16xf32>
    %319 = arith.addf %299, %318 : vector<16x16xf32>
    %c6_135 = arith.constant 6 : index
    %c8_136 = arith.constant 8 : index
    %320 = vector.load %arg5[%c6_135, %c8_136] : memref<24x24xf32, #tpu.memory_space<vmem>>, vector<16x16xf32>
    %c62 = arith.constant 62 : index
    %321 = memref.load %arg2[%c62] : memref<81xf32, #tpu.memory_space<smem>>
    %322 = vector.broadcast %321 : f32 to vector<16x16xf32>
    %323 = arith.mulf %320, %322 : vector<16x16xf32>
    %324 = arith.addf %304, %323 : vector<16x16xf32>
    %c7_137 = arith.constant 7 : index
    %c0_138 = arith.constant 0 : index
    %325 = vector.load %arg5[%c7_137, %c0_138] : memref<24x24xf32, #tpu.memory_space<vmem>>, vector<16x16xf32>
    %c63 = arith.constant 63 : index
    %326 = memref.load %arg2[%c63] : memref<81xf32, #tpu.memory_space<smem>>
    %327 = vector.broadcast %326 : f32 to vector<16x16xf32>
    %328 = arith.mulf %325, %327 : vector<16x16xf32>
    %329 = arith.addf %309, %328 : vector<16x16xf32>
    %c7_139 = arith.constant 7 : index
    %c1_140 = arith.constant 1 : index
    %330 = vector.load %arg5[%c7_139, %c1_140] : memref<24x24xf32, #tpu.memory_space<vmem>>, vector<16x16xf32>
    %c64 = arith.constant 64 : index
    %331 = memref.load %arg2[%c64] : memref<81xf32, #tpu.memory_space<smem>>
    %332 = vector.broadcast %331 : f32 to vector<16x16xf32>
    %333 = arith.mulf %330, %332 : vector<16x16xf32>
    %334 = arith.addf %314, %333 : vector<16x16xf32>
    %c7_141 = arith.constant 7 : index
    %c2_142 = arith.constant 2 : index
    %335 = vector.load %arg5[%c7_141, %c2_142] : memref<24x24xf32, #tpu.memory_space<vmem>>, vector<16x16xf32>
    %c65 = arith.constant 65 : index
    %336 = memref.load %arg2[%c65] : memref<81xf32, #tpu.memory_space<smem>>
    %337 = vector.broadcast %336 : f32 to vector<16x16xf32>
    %338 = arith.mulf %335, %337 : vector<16x16xf32>
    %339 = arith.addf %319, %338 : vector<16x16xf32>
    %c7_143 = arith.constant 7 : index
    %c3_144 = arith.constant 3 : index
    %340 = vector.load %arg5[%c7_143, %c3_144] : memref<24x24xf32, #tpu.memory_space<vmem>>, vector<16x16xf32>
    %c66 = arith.constant 66 : index
    %341 = memref.load %arg2[%c66] : memref<81xf32, #tpu.memory_space<smem>>
    %342 = vector.broadcast %341 : f32 to vector<16x16xf32>
    %343 = arith.mulf %340, %342 : vector<16x16xf32>
    %344 = arith.addf %324, %343 : vector<16x16xf32>
    %c7_145 = arith.constant 7 : index
    %c4_146 = arith.constant 4 : index
    %345 = vector.load %arg5[%c7_145, %c4_146] : memref<24x24xf32, #tpu.memory_space<vmem>>, vector<16x16xf32>
    %c67 = arith.constant 67 : index
    %346 = memref.load %arg2[%c67] : memref<81xf32, #tpu.memory_space<smem>>
    %347 = vector.broadcast %346 : f32 to vector<16x16xf32>
    %348 = arith.mulf %345, %347 : vector<16x16xf32>
    %349 = arith.addf %329, %348 : vector<16x16xf32>
    %c7_147 = arith.constant 7 : index
    %c5_148 = arith.constant 5 : index
    %350 = vector.load %arg5[%c7_147, %c5_148] : memref<24x24xf32, #tpu.memory_space<vmem>>, vector<16x16xf32>
    %c68 = arith.constant 68 : index
    %351 = memref.load %arg2[%c68] : memref<81xf32, #tpu.memory_space<smem>>
    %352 = vector.broadcast %351 : f32 to vector<16x16xf32>
    %353 = arith.mulf %350, %352 : vector<16x16xf32>
    %354 = arith.addf %334, %353 : vector<16x16xf32>
    %c7_149 = arith.constant 7 : index
    %c6_150 = arith.constant 6 : index
    %355 = vector.load %arg5[%c7_149, %c6_150] : memref<24x24xf32, #tpu.memory_space<vmem>>, vector<16x16xf32>
    %c69 = arith.constant 69 : index
    %356 = memref.load %arg2[%c69] : memref<81xf32, #tpu.memory_space<smem>>
    %357 = vector.broadcast %356 : f32 to vector<16x16xf32>
    %358 = arith.mulf %355, %357 : vector<16x16xf32>
    %359 = arith.addf %339, %358 : vector<16x16xf32>
    %c7_151 = arith.constant 7 : index
    %c7_152 = arith.constant 7 : index
    %360 = vector.load %arg5[%c7_151, %c7_152] : memref<24x24xf32, #tpu.memory_space<vmem>>, vector<16x16xf32>
    %c70 = arith.constant 70 : index
    %361 = memref.load %arg2[%c70] : memref<81xf32, #tpu.memory_space<smem>>
    %362 = vector.broadcast %361 : f32 to vector<16x16xf32>
    %363 = arith.mulf %360, %362 : vector<16x16xf32>
    %364 = arith.addf %344, %363 : vector<16x16xf32>
    %c7_153 = arith.constant 7 : index
    %c8_154 = arith.constant 8 : index
    %365 = vector.load %arg5[%c7_153, %c8_154] : memref<24x24xf32, #tpu.memory_space<vmem>>, vector<16x16xf32>
    %c71 = arith.constant 71 : index
    %366 = memref.load %arg2[%c71] : memref<81xf32, #tpu.memory_space<smem>>
    %367 = vector.broadcast %366 : f32 to vector<16x16xf32>
    %368 = arith.mulf %365, %367 : vector<16x16xf32>
    %369 = arith.addf %349, %368 : vector<16x16xf32>
    %c8_155 = arith.constant 8 : index
    %c0_156 = arith.constant 0 : index
    %370 = vector.load %arg5[%c8_155, %c0_156] : memref<24x24xf32, #tpu.memory_space<vmem>>, vector<16x16xf32>
    %c72 = arith.constant 72 : index
    %371 = memref.load %arg2[%c72] : memref<81xf32, #tpu.memory_space<smem>>
    %372 = vector.broadcast %371 : f32 to vector<16x16xf32>
    %373 = arith.mulf %370, %372 : vector<16x16xf32>
    %374 = arith.addf %354, %373 : vector<16x16xf32>
    %c8_157 = arith.constant 8 : index
    %c1_158 = arith.constant 1 : index
    %375 = vector.load %arg5[%c8_157, %c1_158] : memref<24x24xf32, #tpu.memory_space<vmem>>, vector<16x16xf32>
    %c73 = arith.constant 73 : index
    %376 = memref.load %arg2[%c73] : memref<81xf32, #tpu.memory_space<smem>>
    %377 = vector.broadcast %376 : f32 to vector<16x16xf32>
    %378 = arith.mulf %375, %377 : vector<16x16xf32>
    %379 = arith.addf %359, %378 : vector<16x16xf32>
    %c8_159 = arith.constant 8 : index
    %c2_160 = arith.constant 2 : index
    %380 = vector.load %arg5[%c8_159, %c2_160] : memref<24x24xf32, #tpu.memory_space<vmem>>, vector<16x16xf32>
    %c74 = arith.constant 74 : index
    %381 = memref.load %arg2[%c74] : memref<81xf32, #tpu.memory_space<smem>>
    %382 = vector.broadcast %381 : f32 to vector<16x16xf32>
    %383 = arith.mulf %380, %382 : vector<16x16xf32>
    %384 = arith.addf %364, %383 : vector<16x16xf32>
    %c8_161 = arith.constant 8 : index
    %c3_162 = arith.constant 3 : index
    %385 = vector.load %arg5[%c8_161, %c3_162] : memref<24x24xf32, #tpu.memory_space<vmem>>, vector<16x16xf32>
    %c75 = arith.constant 75 : index
    %386 = memref.load %arg2[%c75] : memref<81xf32, #tpu.memory_space<smem>>
    %387 = vector.broadcast %386 : f32 to vector<16x16xf32>
    %388 = arith.mulf %385, %387 : vector<16x16xf32>
    %389 = arith.addf %369, %388 : vector<16x16xf32>
    %c8_163 = arith.constant 8 : index
    %c4_164 = arith.constant 4 : index
    %390 = vector.load %arg5[%c8_163, %c4_164] : memref<24x24xf32, #tpu.memory_space<vmem>>, vector<16x16xf32>
    %c76 = arith.constant 76 : index
    %391 = memref.load %arg2[%c76] : memref<81xf32, #tpu.memory_space<smem>>
    %392 = vector.broadcast %391 : f32 to vector<16x16xf32>
    %393 = arith.mulf %390, %392 : vector<16x16xf32>
    %394 = arith.addf %374, %393 : vector<16x16xf32>
    %c8_165 = arith.constant 8 : index
    %c5_166 = arith.constant 5 : index
    %395 = vector.load %arg5[%c8_165, %c5_166] : memref<24x24xf32, #tpu.memory_space<vmem>>, vector<16x16xf32>
    %c77 = arith.constant 77 : index
    %396 = memref.load %arg2[%c77] : memref<81xf32, #tpu.memory_space<smem>>
    %397 = vector.broadcast %396 : f32 to vector<16x16xf32>
    %398 = arith.mulf %395, %397 : vector<16x16xf32>
    %399 = arith.addf %379, %398 : vector<16x16xf32>
    %c8_167 = arith.constant 8 : index
    %c6_168 = arith.constant 6 : index
    %400 = vector.load %arg5[%c8_167, %c6_168] : memref<24x24xf32, #tpu.memory_space<vmem>>, vector<16x16xf32>
    %c78 = arith.constant 78 : index
    %401 = memref.load %arg2[%c78] : memref<81xf32, #tpu.memory_space<smem>>
    %402 = vector.broadcast %401 : f32 to vector<16x16xf32>
    %403 = arith.mulf %400, %402 : vector<16x16xf32>
    %404 = arith.addf %384, %403 : vector<16x16xf32>
    %c8_169 = arith.constant 8 : index
    %c7_170 = arith.constant 7 : index
    %405 = vector.load %arg5[%c8_169, %c7_170] : memref<24x24xf32, #tpu.memory_space<vmem>>, vector<16x16xf32>
    %c79 = arith.constant 79 : index
    %406 = memref.load %arg2[%c79] : memref<81xf32, #tpu.memory_space<smem>>
    %407 = vector.broadcast %406 : f32 to vector<16x16xf32>
    %408 = arith.mulf %405, %407 : vector<16x16xf32>
    %409 = arith.addf %389, %408 : vector<16x16xf32>
    %c8_171 = arith.constant 8 : index
    %c8_172 = arith.constant 8 : index
    %410 = vector.load %arg5[%c8_171, %c8_172] : memref<24x24xf32, #tpu.memory_space<vmem>>, vector<16x16xf32>
    %c80 = arith.constant 80 : index
    %411 = memref.load %arg2[%c80] : memref<81xf32, #tpu.memory_space<smem>>
    %412 = vector.broadcast %411 : f32 to vector<16x16xf32>
    %413 = arith.mulf %410, %412 : vector<16x16xf32>
    %414 = arith.addf %394, %413 : vector<16x16xf32>
    %415 = arith.addf %414, %399 : vector<16x16xf32>
    %416 = arith.addf %404, %409 : vector<16x16xf32>
    %417 = arith.addf %415, %416 : vector<16x16xf32>
    %c0_173 = arith.constant 0 : index
    %c0_174 = arith.constant 0 : index
    %c0_175 = arith.constant 0 : index
    %418 = vector.load %arg4[%c0_173, %c0_174, %c0_175] : memref<1x16x16xf32, #tpu.memory_space<vmem>>, vector<1x16x16xf32>
    %419 = vector.shape_cast %418 : vector<1x16x16xf32> to vector<16x16xf32>
    %420 = vector.shape_cast %417 : vector<16x16xf32> to vector<1x16x16xf32>
    tpu.vector_store %arg4[%c0_173, %c0_174, %c0_175], %420 {strides = array<i32>} : memref<1x16x16xf32, #tpu.memory_space<vmem>>, vector<1x16x16xf32>,
    return
  }
  func.func @transform_0(%arg0: i32) -> (i32, i32, i32) {
    %c0_i32 = arith.constant 0 : i32
    %c0_i32_0 = arith.constant 0 : i32
    %c0_i32_1 = arith.constant 0 : i32
    return %arg0, %c0_i32, %c0_i32_0 : i32, i32, i32
  }
  func.func @transform_1(%arg0: i32) -> i32 {
    %c0_i32 = arith.constant 0 : i32
    %c0_i32_0 = arith.constant 0 : i32
    return %c0_i32 : i32
  }
  func.func @transform_2(%arg0: i32) -> i32 {
    %c0_i32 = arith.constant 0 : i32
    %c0_i32_0 = arith.constant 0 : i32
    return %c0_i32 : i32
  }
  func.func @transform_3(%arg0: i32) -> (i32, i32, i32) {
    %c0_i32 = arith.constant 0 : i32
    %c0_i32_0 = arith.constant 0 : i32
    %c0_i32_1 = arith.constant 0 : i32
    return %arg0, %c0_i32, %c0_i32_0 : i32, i32, i32
  }
}

</mosaic_0001>

<bundles_post_ra>
// kernel: forward.1
= control target key start
LH: loop header
LB: loop body
LE: loop exit
PB: predicated region body
PF: predicated region fallthrough
CT: control target
= control target key end

     0   :  { %s2551_s0 = inlined_call_operand.hbm [shape: f32[2,16,16], index: 0, kind: input, shape index: {}]   ;;  %s2552_s1 = inlined_call_operand.vmem [shape: f32[81], index: 1, kind: input, shape index: {}]   ;;  %s2553_s2 = inlined_call_operand.<no memory space> [shape: f32[1], index: 2, kind: input, shape index: {}]   ;;  %s2554_s3 = inlined_call_operand.hbm [shape: f32[2,16,16], index: 3, kind: output, shape index: {}]  }
   0x1   :  { %8 = sst [smem:[#allocation3]] %s2553_s2 }
   0x2   :  { %9 = vsyncpa [#allocation5], 0 }
   0x3   :  { %11 = vsyncpa [#allocation5 + $0x1], 0 }
   0x4   :  { %12 = vsyncpa [#allocation7], 0 }
   0x5   :  { %13 = vsyncpa [#allocation6], 0 }
   0x6   :  { %15 = vsyncpa [#allocation6 + $0x1], 0  ;;  %s1748_s14 = smov 0   ;;  %s1750_s15 = smov 0  }
   0x7   :  { %s1752_s16 = smov 0   ;;  %s1754_s17 = smov 0  }
   0x8 LB: > { %s1769_s2 = sadd.s32 4294967295, %s1703_s17   ;;  %s1411_s18 = sadd.s32 4294967294, %s1703_s17   ;;  %s1703_s17 = sphi %s1754_s17, %s2592_s17   ;;  %s1699_s16 = sphi %s1752_s16, %s2591_s16   ;;  %s1695_s15 = sphi %s1750_s15, %s2590_s15   ;;  %s1691_s14 = sphi %s1748_s14, %s2589_s14  }
   0x9   : > { %s1773_s19 = sadd.s32 1, %s1703_s17   ;;  %s28_s20 = sadd.s32 1, %s1699_s16 }
   0xa   : > { %s25_s21 = ssub.s32 %s1703_s17, %s1773_s19  ;;  %p35_p0 = scmp.ne.s32.totalorder %s1699_s16, %s1695_s15 }
   0xb   : > { %p26_p1 = scmp.eq.s32.totalorder %s25_s21, 0  ;;  %p36_p2 = scmp.eq.s32.totalorder %s1703_s17, 0 }
   0xc   : > { %p41_p3 = scmp.ne.s32.totalorder %s1695_s15, %s1691_s14  ;;  %p2556_p4 = scmp.eq.s32.totalorder %s1769_s2, 0 }
   0xd   : > { %s1785_s22 = scalar_select %p26_p1, %s1699_s16, %s28_s20  }
   0xe   : > { %p1787_p5 = por %p36_p2, %p35_p0  ;;  %p1793_p6 = por %p2556_p4, %p41_p3 }
   0xf   : > { %p107_p7 = scmp.eq.s32.totalorder %s1769_s2, 1  ;;  %p113_p8 = scmp.eq.s32.totalorder %s1411_s18, 1 }
  0x10   : > { %s2568_s24 = scalar_select %p1793_p6, 1, 0 }
  0x11   : > { %p1412_p9 = scmp.ge.s32.totalorder %s1703_s17, 1  ;;  %p120_p10 = scmp.lt.s32.totalorder %s1703_s17, 3 }
  0x12   : > { %p1800_p11 = por %p107_p7, %p35_p0  ;;  %p1804_p12 = por %p113_p8, %p41_p3 }
  0x13   : > { %p1808_p13 = pnand %p1412_p9, %p120_p10  ;;  %s133_s30 = sshll.u32 %s2552_s1, 4  ;;  %s134_s30 = int_to_ptr.vmem [resolvable:$true] %s133_s30 }
  0x14   : > { %s2569_s25 = scalar_select %p1800_p11, 1, 0 }
  0x15   : > { %s2570_s26 = scalar_select %p1804_p12, 1, 0 }
  0x16   : > { %p1517_p1 = pneg %p1808_p13  ;;  %p1530_p2 = scmp.lt.s32.totalorder %s1703_s17, 2 }
  0x17   : > { %s147_s5 = sand.u32 1, %s1699_s16   ;;  %s1588_s8 = scalar_lea.vmem %s134_s30, 16 }
  0x18   : > { %p1821_p7 = pnand %p1517_p1, %p2556_p4  ;;  %p1828_p3 = pnand %p1530_p2, %p1787_p5 }
  0x19   : > { %s1415_s7 = sshll.u32 %s147_s5, 4  ;;  %p1589_p8 = scmp.ne.s32.totalorder %s134_s30, %s1588_s8 }
  0x1a   : > { %p1590_p9 = pneg %p1821_p7  ;;  %p1596_p12 = scmp.lt.s32.totalorder %s134_s30, %s134_s30 }
  0x1b   : > { %p1597_p11 = scmp.lt.s32.totalorder %s1588_s8, %s1588_s8 }
  0x1c   : > { %p1591_p10 = pnand %p1590_p9, %p1589_p8 }
  0x1d   : > { %p1598_p1 = por %p1597_p11, %p1596_p12 }
  0x1e   : > { %p1592_p0 = pneg %p1591_p10 }
  0x20   : > { %p1599_p4 = pnand %p1598_p1, %p1592_p0 }
  0x22   : > { %1602 = shalt.err (!%p1599_p4)
}
  0x23   : > { %s1705_s9 = smov [#allocation8]   ;;  %s1507_s10 = sshll.u32 %s1703_s17, 8 }
  0x24   : > { %1520 = dma.vmem_to_smem (!%p1821_p7), %s134_s30, 16, %s1705_s9, [#allocation7]  }
  0x25   : > { %s151_s11 = scalar_lea.vmem [#allocation4], %s1415_s7  ;;  %s1840_s20 = scalar_lea.hbm %s2551_s0, %s1507_s10 }
  0x26   : > { %s158_s12 = sshll.u32 %s151_s11, 4  ;;  %s1844_s21 = scalar_lea.sflag [#allocation5], %s147_s5  ;;  %s1842_s12 = int_to_ptr.vmem [resolvable:$true] %s158_s12 }
  0x27   : > { %s1603_s23 = scalar_lea.hbm %s1840_s20, 256  ;;  %p1605_p5 = pneg %p1828_p3 }
  0x28   : > { %p1604_p4 = scmp.ne.s32.totalorder %s1840_s20, %s1603_s23  ;;  %s1608_s30 = scalar_lea.hbm %s2551_s0, 512 }
  0x29   : > { %p1609_p0 = scmp.lt.u32.totalorder %s1840_s20, %s2551_s0  ;;  %p1610_p2 = scmp.lt.u32.totalorder %s1608_s30, %s1603_s23 }
  0x2a   : > { %p1606_p11 = pnand %p1605_p5, %p1604_p4  ;;  %p1612_p8 = scmp.lt.u32.totalorder %s1603_s23, %s1840_s20 }
  0x2b   : > { %p1611_p7 = por %p1610_p2, %p1609_p0 }
  0x2c   : > { %p1607_p12 = pneg %p1606_p11 }
  0x2d   : > { %p1613_p9 = por %p1612_p8, %p1611_p7 }
  0x2f   : > { %p1614_p10 = pnand %p1613_p9, %p1607_p12 }
  0x31   : > { %1617 = shalt.err (!%p1614_p10)
}
  0x32   : > { %s1618_s5 = scalar_lea.vmem %s1842_s12, 256  ;;  %s1706_s8 = smov [#allocation4]  }
  0x33   : > { %p1619_p1 = scmp.ne.s32.totalorder %s1842_s12, %s1618_s5  ;;  %s1623_s9 = sshll.u32 %s1706_s8, 4  ;;  %s1624_s9 = int_to_ptr.vmem [resolvable:$false] %s1623_s9 }
  0x34   : > { %s1625_s10 = scalar_lea.vmem %s1624_s9, 512  ;;  %p1626_p6 = scmp.lt.s32.totalorder %s1842_s12, %s1624_s9 }
  0x35   : > { %p1621_p4 = pnand %p1619_p1, %p1605_p5  ;;  %p1627_p0 = scmp.lt.s32.totalorder %s1625_s10, %s1618_s5 }
  0x37   : > { %p1622_p11 = pneg %p1621_p4  ;;  %p1628_p2 = por %p1627_p0, %p1626_p6 }
  0x39   : > { %p1629_p7 = pnand %p1628_p2, %p1622_p11 }
  0x3b   : > { %1632 = shalt.err (!%p1629_p7)
}
  0x3c   : > { %s1707_s11 = smov 128   ;;  %s1708_s13 = smov 8  }
  0x3d   : > { %1524 = dma.hbm_to_vmem [thread:$0]  (!%p1828_p3), %s1840_s20, 256, %s1842_s12, %s1844_s21, %s1707_s11, %s1707_s11, %s1708_s13  }
  0x3e   : > { %170 = sbr.rel (%p1808_p13) target bundleno = 699 (0x2bb), region = 32 }
  0x45   : > { %s1875_s18 = sand.u32 1, %s1695_s15   ;;  %p2574_p6 = scmp.ne.s32.totalorder %s2568_s24, 0 }
  0x46   : > { %s1419_s23 = sshll.u32 %s1875_s18, 4  ;;  %s173_s28 = scalar_lea.sflag [#allocation5], %s1875_s18 }
  0x47   : > { %s176_s29 = scalar_lea.vmem [#allocation4], %s1419_s23 }
  0x48   : > { %1678 = dma.done.wait (%p2574_p6), %s173_s28, 256  }
  0x49   : > { %1680 = vsyncadd (%p2574_p6), %s173_s28, 4294967040  ;;  %p2575_p3 = scmp.eq.s32.totalorder %s1769_s2, 0 }
  0x4b   : > { %1682 = dma.done.wait (%p2575_p3), [#allocation7], 16   ;;  %p2576_p13 = pmov %p2575_p3 }
  0x4d   : > { %1684 = vsyncadd (%p2576_p13), [#allocation7], 4294967280 }
  0x4e   : > { %185 = sfence }
  0x4f   : > { %v208_v0 = vld [vmem:[%s176_s29] sm:$0xff]  ;;  %vm204_vm0 = vcmask 195584   ;;  %s1709_s27 = smov 4   ;;  %v1710_v1 = vmov 0.0   ;;  %v209_v2 = vld [vmem:[%s176_s29 + $0x8] sm:$0xff]  ;;  %vm218_vm1 = vcmask 162848  }
  0x50   : > { %212 = vrot.lane.b32.xlu0 %v208_v0, %s1709_s27  ;;  %205 = vst.msk [vmem:[#allocation2] sm:$0xff] %vm204_vm0, %v1710_v1  ;;  %206 = vst.msk [vmem:[#allocation2 + $0x8] sm:$0xff] %vm204_vm0, %v1710_v1  ;;  %s1426_s24 = sld [smem:[#allocation8 + $0x5]]  ;;  %s1425_s6 = sld [smem:[#allocation8 + $0x4]]  ;;  %vm1309_vm2 = vcmask 130048  }
  0x51   : > { %207 = vst.msk [vmem:[#allocation2 + $0x10] sm:$0xff] %vm204_vm0, %v1710_v1  ;;  %s1427_s12 = sld [smem:[#allocation8 + $0x6]]  ;;  %s1889_s20 = sld [smem:[#allocation8 + $0x7]] }
  0x52   : > { %s1895_s21 = sld [smem:[#allocation8 + $0x8]]  ;;  %s1711_s30 = smov 124  }
  0x53   : > { %s1904_s4 = sld [smem:[#allocation8 + $0x9]]  ;;  %s1911_s7 = sld [smem:[#allocation8 + $0xa]] }
  0x54   : > { %214 = vrot.lane.b32.xlu0 %v209_v2, %s1709_s27  ;;  %s1917_s5 = sld [smem:[#allocation8 + $0x1c]]  ;;  %s1920_s8 = sld [smem:[#allocation8 + $0xb]] }
  0x55   : > { %s1712_s9 = smov 120   ;;  %s1926_s10 = sld [smem:[#allocation8 + $0xc]] }
  0x56   : > { %v264_v5 = vstv %s1426_s24  ;;  %v250_v6 = vstv %s1425_s6  ;;  %s1713_s11 = smov 1   ;;  %s1434_s13 = sld [smem:[#allocation8 + $0xd]] }
  0x57   : > { %v278_v10 = vstv %s1427_s12  ;;  %v292_v14 = vstv %s1889_s20  ;;  %s1435_s28 = sld [smem:[#allocation8 + $0xe]]  ;;  %s1436_s29 = sld [smem:[#allocation8 + $0xf]] }
  0x58   : > { %v306_v17 = vstv %s1895_s21  ;;  %s1714_s27 = smov 125   ;;  %s1437_s24 = sld [smem:[#allocation8 + $0x10]] }
  0x59   : > { %v322_v21 = vstv %s1904_s4  ;;  %v336_v24 = vstv %s1911_s7  ;;  %s1949_s6 = sld [smem:[#allocation8 + $0x11]]  ;;  %s1953_s12 = sld [smem:[#allocation8 + $0x12]] }
  0x5a   : > { %v592_v28 = vstv %s1917_s5  ;;  %v350_v29 = vstv %s1920_s8  ;;  %s1958_s20 = sld [smem:[#allocation8 + $0x13]]  ;;  %s1715_s21 = smov 121  }
  0x5b   : > { %v364_v34 = vstv %s1926_s10  ;;  %s1965_s4 = sld [smem:[#allocation8 + $0x14]]  ;;  %s1971_s7 = sld [smem:[#allocation8 + $0x15]] }
  0x5c   : > { %v378_v37 = vstv %s1434_s13  ;;  %s1716_s8 = smov 2   ;;  %s1443_s10 = sld [smem:[#allocation8 + $0x16]] }
  0x5d   : > { %v392_v40 = vstv %s1435_s28  ;;  %v406_v43 = vstv %s1436_s29  ;;  %s1444_s13 = sld [smem:[#allocation8 + $0x17]]  ;;  %s1717_s28 = smov 126  }
  0x5e   : > { %v420_v46 = vstv %s1437_s24  ;;  %s1988_s29 = sld [smem:[#allocation8 + $0x18]]  ;;  %s1448_s24 = sld [smem:[#allocation8 + $0x1b]] }
  0x5f   : > { %v434_v49 = vstv %s1949_s6  ;;  %v450_v53 = vstv %s1953_s12  ;;  %s1452_s6 = sld [smem:[#allocation8 + $0x1f]]  ;;  %s1718_s12 = smov 122  }
  0x60   : > { %v464_v56 = vstv %s1958_s20  ;;  %s1456_s20 = sld [smem:[#allocation8 + $0x23]]  ;;  %s1455_s5 = sld [smem:[#allocation8 + $0x22]] }
  0x61   : > { %v478_v59 = vstv %s1965_s4  ;;  %v492_v63 = vstv %s1971_s7  ;;  %s1719_s4 = smov 3   ;;  %s1464_s7 = sld [smem:[#allocation8 + $0x2b]] }
  0x62   : > { %v506_v2 = vstv %s1443_s10  ;;  %s1468_s10 = sld [smem:[#allocation8 + $0x2f]]  ;;  %p2586_p12 = scmp.ne.s32.totalorder %s2569_s25, 0 }
  0xc2   : > { %v213_v3 = vpop.permute.xlu0 %212 }
  0xc3   : > { %219 = vst.msk [vmem:[#allocation2 + $0x4] sm:$0xff] %vm218_vm1, %v213_v3 }
  0xc6   : > { %v215_v4 = vpop.permute.xlu0 %214 }
  0xc7   : > { %220 = vst.msk [vmem:[#allocation2 + $0xc] sm:$0xff] %vm218_vm1, %v215_v4 }
  0xca   : > { %v1891_v7 = vld [vmem:[#allocation2] sm:$0xff] }
  0xcb   : > { %v265_v8 = vmul.f32 %v264_v5, %v1891_v7  ;;  %v251_v9 = vmul.f32 %v250_v6, %v1891_v7  ;;  %v279_v13 = vmul.f32 %v278_v10, %v1891_v7  ;;  %v293_v15 = vmul.f32 %v292_v14, %v1891_v7  ;;  %v319_v20 = vld [vmem:[#allocation2 + $0x1] sm:$0xff] }
  0xcc   : > { %v307_v18 = vmul.f32 %v306_v17, %v1891_v7  ;;  %v323_v22 = vmul.f32 %v322_v21, %v319_v20  ;;  %v337_v26 = vmul.f32 %v336_v24, %v319_v20  ;;  %v351_v32 = vmul.f32 %v350_v29, %v319_v20  ;;  %v1962_v52 = vld [vmem:[#allocation2 + $0x2] sm:$0xff] }
  0xcd   : > { %269 = vrot.lane.b32.xlu0 %v265_v8, %s1711_s30  ;;  %255 = vrot.lane.b32.xlu1 %v251_v9, %s1711_s30  ;;  %v365_v35 = vmul.f32 %v364_v34, %v319_v20  ;;  %v379_v38 = vmul.f32 %v378_v37, %v319_v20  ;;  %v393_v41 = vmul.f32 %v392_v40, %v319_v20  ;;  %v534_v9 = vstv %s1988_s29  ;;  %s1454_s29 = sld [smem:[#allocation8 + $0x21]] }
  0xce   : > { %v1899_v11 = vld [vmem:[#allocation2 + $0x8] sm:$0xff]  ;;  %v407_v44 = vmul.f32 %v406_v43, %v319_v20  ;;  %v421_v47 = vmul.f32 %v420_v46, %v319_v20  ;;  %v435_v50 = vmul.f32 %v434_v49, %v319_v20  ;;  %v451_v54 = vmul.f32 %v450_v53, %v1962_v52 }
  0xcf   : > { %v252_v12 = vmul.f32 %v250_v6, %v1899_v11  ;;  %v266_v16 = vmul.f32 %v264_v5, %v1899_v11  ;;  %v280_v19 = vmul.f32 %v278_v10, %v1899_v11  ;;  %v294_v23 = vmul.f32 %v292_v14, %v1899_v11  ;;  %v1930_v25 = vld [vmem:[#allocation2 + $0xb] sm:$0xff] }
  0xd0   : > { %v308_v27 = vmul.f32 %v306_v17, %v1899_v11  ;;  %v320_v30 = vld [vmem:[#allocation2 + $0x9] sm:$0xff]  ;;  %v1938_v31 = vmul.f32 %v592_v28, %v1930_v25  ;;  %v465_v57 = vmul.f32 %v464_v56, %v1962_v52  ;;  %v479_v61 = vmul.f32 %v478_v59, %v1962_v52 }
  0xd1   : > { %283 = vrot.lane.b32.xlu0 %v279_v13, %s1711_s30  ;;  %257 = vrot.lane.b32.xlu1 %v252_v12, %s1711_s30  ;;  %v324_v33 = vmul.f32 %v322_v21, %v320_v30  ;;  %v338_v36 = vmul.f32 %v336_v24, %v320_v30  ;;  %v352_v39 = vmul.f32 %v350_v29, %v320_v30  ;;  %v1977_v60 = vld [vmem:[#allocation2 + $0xa] sm:$0xff]  ;;  %v520_v5 = vstv %s1444_s13  ;;  %s1720_s13 = smov 127  }
  0xd2   : > { %v366_v42 = vmul.f32 %v364_v34, %v320_v30  ;;  %v380_v45 = vmul.f32 %v378_v37, %v320_v30  ;;  %v394_v48 = vmul.f32 %v392_v40, %v320_v30  ;;  %v408_v51 = vmul.f32 %v406_v43, %v320_v30  ;;  %v2025_v29 = vld [vmem:[#allocation2 + $0xd] sm:$0xff] }
  0xd3   : > { %v422_v55 = vmul.f32 %v420_v46, %v320_v30  ;;  %v436_v58 = vmul.f32 %v434_v49, %v320_v30  ;;  %v452_v62 = vmul.f32 %v450_v53, %v1977_v60  ;;  %v493_v0 = vmul.f32 %v492_v63, %v1962_v52  ;;  %2577 = vst [vmem:[#allocation13_spill] sm:$0xff] %v2025_v29  ;;  %v2057_v53 = vld [vmem:[#allocation2 + $0x7] sm:$0xff] }
  0xd4   : > { %v466_v1 = vmul.f32 %v464_v56, %v1977_v60  ;;  %v507_v3 = vmul.f32 %v506_v2, %v1962_v52  ;;  %v480_v4 = vmul.f32 %v478_v59, %v1977_v60  ;;  %v521_v6 = vmul.f32 %v520_v5, %v1962_v52  ;;  %2580 = vst [vmem:[#allocation16_spill] sm:$0xff] %v2057_v53 }
  0xd5   : > { %297 = vrot.lane.b32.xlu0 %v293_v15, %s1711_s30  ;;  %271 = vrot.lane.b32.xlu1 %v266_v16, %s1711_s30  ;;  %v494_v8 = vmul.f32 %v492_v63, %v1977_v60  ;;  %v535_v10 = vmul.f32 %v534_v9, %v1962_v52  ;;  %v508_v12 = vmul.f32 %v506_v2, %v1977_v60  ;;  %v578_v13 = vstv %s1448_s24  ;;  %v2009_v16 = vld [vmem:[#allocation2 + $0x3] sm:$0xff]  ;;  %s1472_s24 = sld [smem:[#allocation8 + $0x33]] }
  0xd6   : > { %v580_v14 = vmul.f32 %v578_v13, %v1930_v25  ;;  %v522_v15 = vmul.f32 %v520_v5, %v1977_v60  ;;  %v634_v17 = vstv %s1452_s6  ;;  %v690_v20 = vstv %s1456_s20  ;;  %s1721_s6 = smov 123   ;;  %s1476_s20 = sld [smem:[#allocation8 + $0x37]] }
  0xd7   : > { %v692_v21 = vmul.f32 %v690_v20, %v1930_v25  ;;  %v772_v24 = vstv %s1464_s7  ;;  %v830_v30 = vstv %s1468_s10  ;;  %s1480_s7 = sld [smem:[#allocation8 + $0x3b]]  ;;  %s1484_s10 = sld [smem:[#allocation8 + $0x3f]] }
  0xd9   : > { %311 = vrot.lane.b32.xlu0 %v307_v18, %s1712_s9  ;;  %285 = vrot.lane.b32.xlu1 %v280_v19, %s1711_s30  ;;  %v636_v18 = vmul.f32 %v634_v17, %v1930_v25  ;;  %v579_v19 = vmul.f32 %v578_v13, %v2009_v16 }
  0xdc   : > { %v944_v40 = vstv %s1476_s20  ;;  %s1492_s20 = sld [smem:[#allocation8 + $0x47]] }
  0xdd   : > { %327 = vrot.lane.b32.xlu0 %v323_v22, %s1713_s11  ;;  %299 = vrot.lane.b32.xlu1 %v294_v23, %s1711_s30  ;;  %v635_v22 = vmul.f32 %v634_v17, %v2009_v16  ;;  %v2019_v23 = vld [vmem:[#allocation2 + $0xc] sm:$0xff]  ;;  %v1000_v43 = vstv %s1480_s7  ;;  %s1500_s7 = sld [smem:[#allocation8 + $0x4f]] }
  0xe1   : > { %341 = vrot.lane.b32.xlu0 %v337_v26, %s1713_s11  ;;  %313 = vrot.lane.b32.xlu1 %v308_v27, %s1712_s9  ;;  %v774_v26 = vmul.f32 %v772_v24, %v2019_v23  ;;  %v691_v27 = vmul.f32 %v690_v20, %v2009_v16 }
  0xe5   : > { %355 = vrot.lane.b32.xlu0 %v351_v32, %s1713_s11  ;;  %329 = vrot.lane.b32.xlu1 %v324_v33, %s1713_s11  ;;  %v2027_v32 = vld [vmem:[#allocation2 + $0x4] sm:$0xff]  ;;  %v832_v33 = vmul.f32 %v830_v30, %v2025_v29 }
  0xe6   : > { %v773_v34 = vmul.f32 %v772_v24, %v2027_v32 }
  0xe9   : > { %369 = vrot.lane.b32.xlu0 %v365_v35, %s1714_s27  ;;  %343 = vrot.lane.b32.xlu1 %v338_v36, %s1713_s11  ;;  %v886_v35 = vstv %s1472_s24  ;;  %v2033_v36 = vld [vmem:[#allocation2 + $0x5] sm:$0xff]  ;;  %s1488_s24 = sld [smem:[#allocation8 + $0x43]] }
  0xea   : > { %v888_v37 = vmul.f32 %v886_v35, %v2025_v29 }
  0xed   : > { %383 = vrot.lane.b32.xlu0 %v379_v38, %s1714_s27  ;;  %357 = vrot.lane.b32.xlu1 %v352_v39, %s1713_s11  ;;  %v831_v38 = vmul.f32 %v830_v30, %v2033_v36  ;;  %v2039_v39 = vld [vmem:[#allocation2 + $0xe] sm:$0xff] }
  0xee   : > { %2578 = vst [vmem:[#allocation14_spill] sm:$0xff] %v2039_v39 }
  0xf1   : > { %397 = vrot.lane.b32.xlu0 %v393_v41, %s1714_s27  ;;  %371 = vrot.lane.b32.xlu1 %v366_v42, %s1714_s27  ;;  %v946_v41 = vmul.f32 %v944_v40, %v2039_v39  ;;  %v887_v42 = vmul.f32 %v886_v35, %v2033_v36 }
  0xf5   : > { %411 = vrot.lane.b32.xlu0 %v407_v44, %s1714_s27  ;;  %385 = vrot.lane.b32.xlu1 %v380_v45, %s1714_s27  ;;  %v2045_v44 = vld [vmem:[#allocation2 + $0x6] sm:$0xff]  ;;  %v1002_v45 = vmul.f32 %v1000_v43, %v2039_v39 }
  0xf6   : > { %v945_v46 = vmul.f32 %v944_v40, %v2045_v44 }
  0xf9   : > { %425 = vrot.lane.b32.xlu0 %v421_v47, %s1715_s21  ;;  %399 = vrot.lane.b32.xlu1 %v394_v48, %s1714_s27  ;;  %v2051_v47 = vld [vmem:[#allocation2 + $0xf] sm:$0xff]  ;;  %v1058_v48 = vstv %s1484_s10  ;;  %s2067_s10 = sld [smem:[#allocation8 + $0x19]] }
  0xfa   : > { %2579 = vst [vmem:[#allocation15_spill] sm:$0xff] %v2051_v47  ;;  %v1060_v49 = vmul.f32 %v1058_v48, %v2051_v47 }
  0xfd   : > { %439 = vrot.lane.b32.xlu0 %v435_v50, %s1715_s21  ;;  %413 = vrot.lane.b32.xlu1 %v408_v51, %s1714_s27  ;;  %v1001_v50 = vmul.f32 %v1000_v43, %v2045_v44  ;;  %v1114_v51 = vstv %s1488_s24  ;;  %s2079_s24 = sld [smem:[#allocation8 + $0x1a]]  ;;  %v676_v43 = vstv %s1455_s5  ;;  %s2191_s5 = sld [smem:[#allocation8 + $0x35]] }
  0xfe   : > { %v1116_v56 = vmul.f32 %v1114_v51, %v2051_v47  ;;  %v1115_v63 = vmul.f32 %v1114_v51, %v2057_v53 }
 0x101   : > { %455 = vrot.lane.b32.xlu0 %v451_v54, %s1716_s8  ;;  %427 = vrot.lane.b32.xlu1 %v422_v55, %s1715_s21 }
 0x105   : > { %469 = vrot.lane.b32.xlu0 %v465_v57, %s1716_s8  ;;  %441 = vrot.lane.b32.xlu1 %v436_v58, %s1715_s21  ;;  %v1059_v57 = vmul.f32 %v1058_v48, %v2057_v53  ;;  %v1170_v58 = vstv %s1492_s20  ;;  %s1451_s20 = sld [smem:[#allocation8 + $0x1e]]  ;;  %v678_v48 = vmul.f32 %v676_v43, %v1930_v25 }
 0x106   : > { %v1171_v5 = vmul.f32 %v1170_v58, %v2057_v53 }
 0x109   : > { %483 = vrot.lane.b32.xlu0 %v479_v61, %s1717_s28  ;;  %457 = vrot.lane.b32.xlu1 %v452_v62, %s1716_s8  ;;  %v1172_v62 = vmul.f32 %v1170_v58, %v2051_v47  ;;  %v677_v58 = vmul.f32 %v676_v43, %v2009_v16 }
 0x10d   : > { %497 = vrot.lane.b32.xlu0 %v493_v0, %s1717_s28  ;;  %471 = vrot.lane.b32.xlu1 %v466_v1, %s1716_s8  ;;  %v2077_v0 = vld [vmem:[#allocation2 + $0x10] sm:$0xff]  ;;  %v1252_v1 = vstv %s1500_s7  ;;  %s1462_s7 = sld [smem:[#allocation8 + $0x29]] }
 0x10e   : > { %v1253_v13 = vmul.f32 %v1252_v1, %v1899_v11 }
 0x111   : > { %511 = vrot.lane.b32.xlu0 %v507_v3, %s1717_s28  ;;  %485 = vrot.lane.b32.xlu1 %v480_v4, %s1717_s28  ;;  %v1254_v4 = vmul.f32 %v1252_v1, %v2077_v0 }
 0x115   : > { %525 = vrot.lane.b32.xlu0 %v521_v6, %s1717_s28  ;;  %499 = vrot.lane.b32.xlu1 %v494_v8, %s1717_s28  ;;  %v548_v6 = vstv %s2067_s10  ;;  %s1463_s10 = sld [smem:[#allocation8 + $0x2a]] }
 0x116   : > { %v550_v24 = vmul.f32 %v548_v6, %v1977_v60 }
 0x119   : > { %539 = vrot.lane.b32.xlu0 %v535_v10, %s1718_s12  ;;  %513 = vrot.lane.b32.xlu1 %v508_v12, %s1717_s28  ;;  %v549_v12 = vmul.f32 %v548_v6, %v1962_v52 }
 0x11d   : > { %585 = vrot.lane.b32.xlu0 %v580_v14, %s1719_s4  ;;  %527 = vrot.lane.b32.xlu1 %v522_v15, %s1717_s28  ;;  %v562_v14 = vstv %s2079_s24  ;;  %s2151_s24 = sld [smem:[#allocation8 + $0x2d]] }
 0x11e   : > { %v564_v30 = vmul.f32 %v562_v14, %v1977_v60 }
 0x121   : > { %641 = vrot.lane.b32.xlu0 %v636_v18, %s1720_s13  ;;  %583 = vrot.lane.b32.xlu1 %v579_v19, %s1719_s4  ;;  %v563_v18 = vmul.f32 %v562_v14, %v1962_v52  ;;  %v536_v19 = vmul.f32 %v534_v9, %v1977_v60 }
 0x125   : > { %697 = vrot.lane.b32.xlu0 %v692_v21, %s1721_s6  ;;  %639 = vrot.lane.b32.xlu1 %v635_v22, %s1720_s13  ;;  %v593_v22 = vmul.f32 %v592_v28, %v2009_v16  ;;  %v620_v28 = vstv %s1451_s20  ;;  %s1470_s20 = sld [smem:[#allocation8 + $0x31]] }
 0x126   : > { %v622_v35 = vmul.f32 %v620_v28, %v1930_v25 }
 0x129   : > { %779 = vrot.lane.b32.xlu0 %v774_v26, %s1711_s30  ;;  %695 = vrot.lane.b32.xlu1 %v691_v27, %s1721_s6 }
 0x12d   : > { %837 = vrot.lane.b32.xlu0 %v832_v33, %s1713_s11  ;;  %777 = vrot.lane.b32.xlu1 %v773_v34, %s1711_s30 }
 0x131   : > { %893 = vrot.lane.b32.xlu0 %v888_v37, %s1714_s27  ;;  %835 = vrot.lane.b32.xlu1 %v831_v38, %s1713_s11  ;;  %v662_v38 = vstv %s1454_s29  ;;  %s2181_s29 = sld [smem:[#allocation8 + $0x32]] }
 0x135   : > { %951 = vrot.lane.b32.xlu0 %v946_v41, %s1716_s8  ;;  %891 = vrot.lane.b32.xlu1 %v887_v42, %s1714_s27  ;;  %v664_v41 = vmul.f32 %v662_v38, %v1930_v25  ;;  %v621_v42 = vmul.f32 %v620_v28, %v2009_v16 }
 0x139   : > { %1007 = vrot.lane.b32.xlu0 %v1002_v45, %s1717_s28  ;;  %949 = vrot.lane.b32.xlu1 %v945_v46, %s1716_s8 }
 0x13d   : > { %1065 = vrot.lane.b32.xlu0 %v1060_v49, %s1719_s4  ;;  %1005 = vrot.lane.b32.xlu1 %v1001_v50, %s1717_s28  ;;  %v663_v49 = vmul.f32 %v662_v38, %v2009_v16  ;;  %v744_v50 = vstv %s1462_s7  ;;  %v872_v38 = vstv %s2181_s29  ;;  %s2202_s7 = sld [smem:[#allocation8 + $0x36]]  ;;  %s2261_s29 = sld [smem:[#allocation8 + $0x41]] }
 0x13e   : > { %v874_v43 = vmul.f32 %v872_v38, %v2025_v29 }
 0x13f   : > { %v2061_v54 = vpop.permute.xlu0 %269  ;;  %v2063_v55 = vpop.permute.xlu1 %255 }
 0x141   : > { %1121 = vrot.lane.b32.xlu0 %v1116_v56, %s1720_s13  ;;  %1063 = vrot.lane.b32.xlu1 %v1059_v57, %s1719_s4  ;;  %s1450_s4 = sld [smem:[#allocation8 + $0x1d]]  ;;  %v746_v57 = vmul.f32 %v744_v50, %v2019_v23 }
 0x143   : > { %v2071_v59 = vpop.permute.xlu0 %283  ;;  %v2073_v61 = vpop.permute.xlu1 %257 }
 0x145   : > { %1177 = vrot.lane.b32.xlu0 %v1172_v62, %s1721_s6  ;;  %1119 = vrot.lane.b32.xlu1 %v1115_v63, %s1720_s13 }
 0x147   : > { %v2083_v2 = vpop.permute.xlu0 %297  ;;  %v2085_v3 = vpop.permute.xlu1 %271  ;;  %v606_v52 = vstv %s1450_s4  ;;  %s2161_s4 = sld [smem:[#allocation8 + $0x2e]] }
 0x148   : > { %v608_v27 = vmul.f32 %v606_v52, %v1930_v25  ;;  %v607_v37 = vmul.f32 %v606_v52, %v2009_v16  ;;  %v758_v25 = vstv %s1463_s10  ;;  %s2213_s10 = sld [smem:[#allocation8 + $0x39]] }
 0x149   : > { %1259 = vrot.lane.b32.xlu0 %v1254_v4, %s1711_s30  ;;  %1175 = vrot.lane.b32.xlu1 %v1171_v5, %s1721_s6  ;;  %v760_v1 = vmul.f32 %v758_v25, %v2019_v23  ;;  %v745_v4 = vmul.f32 %v744_v50, %v2027_v32  ;;  %v802_v5 = vstv %s2151_s24  ;;  %v759_v14 = vmul.f32 %v758_v25, %v2027_v32  ;;  %s2215_s24 = sld [smem:[#allocation8 + $0x3]] }
 0x14a   : > { %v803_v52 = vmul.f32 %v802_v5, %v2033_v36  ;;  %v873_v25 = vmul.f32 %v872_v38, %v2033_v36 }
 0x14b   : > { %v2092_v8 = vpop.permute.xlu0 %311  ;;  %v2094_v10 = vpop.permute.xlu1 %285 }
 0x14d   : > { %553 = vrot.lane.b32.xlu0 %v549_v12, %s1718_s12  ;;  %1257 = vrot.lane.b32.xlu1 %v1253_v13, %s1711_s30  ;;  %v804_v13 = vmul.f32 %v802_v5, %v2025_v29 }
 0x14f   : > { %v2101_v15 = vpop.permute.xlu0 %327  ;;  %v2103_v17 = vpop.permute.xlu1 %299 }
 0x151   : > { %567 = vrot.lane.b32.xlu0 %v563_v18, %s1718_s12  ;;  %541 = vrot.lane.b32.xlu1 %v536_v19, %s1718_s12  ;;  %v816_v18 = vstv %s2161_s4  ;;  %s2235_s4 = sld [smem:[#allocation8 + $0x3d]] }
 0x153   : > { %v2111_v20 = vpop.permute.xlu0 %341  ;;  %v2113_v21 = vpop.permute.xlu1 %313 }
 0x155   : > { %597 = vrot.lane.b32.xlu0 %v593_v22, %s1720_s13  ;;  %555 = vrot.lane.b32.xlu1 %v550_v24, %s1718_s12  ;;  %v818_v24 = vmul.f32 %v816_v18, %v2025_v29 }
 0x157   : > { %v2121_v9 = vpop.permute.xlu0 %355  ;;  %v2123_v26 = vpop.permute.xlu1 %329 }
 0x159   : > { %613 = vrot.lane.b32.xlu0 %v608_v27, %s1720_s13  ;;  %569 = vrot.lane.b32.xlu1 %v564_v30, %s1718_s12  ;;  %v858_v27 = vstv %s1470_s20  ;;  %s2247_s20 = sld [smem:[#allocation8 + $0x3e]] }
 0x15b   : > { %v2129_v33 = vpop.permute.xlu0 %369  ;;  %v2131_v34 = vpop.permute.xlu1 %343 }
 0x15d   : > { %627 = vrot.lane.b32.xlu0 %v622_v35, %s1720_s13  ;;  %611 = vrot.lane.b32.xlu1 %v607_v37, %s1720_s13  ;;  %v860_v35 = vmul.f32 %v858_v27, %v2025_v29  ;;  %v817_v37 = vmul.f32 %v816_v18, %v2033_v36  ;;  %v972_v18 = vstv %s2213_s10  ;;  %s2290_s10 = sld [smem:[#allocation8 + $0x46]] }
 0x15f   : > { %v2137_v60 = vpop.permute.xlu0 %383  ;;  %v2139_v40 = vpop.permute.xlu1 %357 }
 0x161   : > { %669 = vrot.lane.b32.xlu0 %v664_v41, %s1721_s6  ;;  %625 = vrot.lane.b32.xlu1 %v621_v42, %s1720_s13 }
 0x163   : > { %v2145_v45 = vpop.permute.xlu0 %397  ;;  %v2147_v46 = vpop.permute.xlu1 %371 }
 0x165   : > { %683 = vrot.lane.b32.xlu0 %v678_v48, %s1721_s6  ;;  %667 = vrot.lane.b32.xlu1 %v663_v49, %s1721_s6  ;;  %v859_v48 = vmul.f32 %v858_v27, %v2033_v36  ;;  %v914_v49 = vstv %s2191_s5  ;;  %s2272_s5 = sld [smem:[#allocation8 + $0x42]] }
 0x167   : > { %v2155_v51 = vpop.permute.xlu0 %411  ;;  %v2157_v56 = vpop.permute.xlu1 %385 }
 0x169   : > { %751 = vrot.lane.b32.xlu0 %v746_v57, %s1711_s30  ;;  %681 = vrot.lane.b32.xlu1 %v677_v58, %s1721_s6  ;;  %v916_v58 = vmul.f32 %v914_v49, %v2025_v29 }
 0x16b   : > { %v2165_v62 = vpop.permute.xlu0 %425  ;;  %v2167_v63 = vpop.permute.xlu1 %399 }
 0x16d   : > { %765 = vrot.lane.b32.xlu0 %v760_v1, %s1711_s30  ;;  %749 = vrot.lane.b32.xlu1 %v745_v4, %s1711_s30  ;;  %v930_v1 = vstv %s2202_s7  ;;  %s2281_s7 = sld [smem:[#allocation8 + $0x45]] }
 0x16e   : > { %v931_v38 = vmul.f32 %v930_v1, %v2045_v44 }
 0x16f   : > { %v2174_v6 = vpop.permute.xlu0 %439  ;;  %v2176_v12 = vpop.permute.xlu1 %413 }
 0x171   : > { %809 = vrot.lane.b32.xlu0 %v804_v13, %s1713_s11  ;;  %763 = vrot.lane.b32.xlu1 %v759_v14, %s1711_s30  ;;  %v932_v13 = vmul.f32 %v930_v1, %v2039_v39  ;;  %v915_v14 = vmul.f32 %v914_v49, %v2033_v36 }
 0x173   : > { %v2185_v19 = vpop.permute.xlu0 %455  ;;  %v2187_v22 = vpop.permute.xlu1 %427 }
 0x175   : > { %823 = vrot.lane.b32.xlu0 %v818_v24, %s1713_s11  ;;  %807 = vrot.lane.b32.xlu1 %v803_v52, %s1713_s11  ;;  %v244_v24 = vstv %s2215_s24  ;;  %s2298_s24 = sld [smem:[#allocation8 + $0x4d]] }
 0x176   : > { %v246_v52 = vmul.f32 %v244_v24, %v1899_v11 }
 0x177   : > { %v2195_v30 = vpop.permute.xlu0 %469  ;;  %v2197_v28 = vpop.permute.xlu1 %441 }
 0x179   : > { %865 = vrot.lane.b32.xlu0 %v860_v35, %s1714_s27  ;;  %821 = vrot.lane.b32.xlu1 %v817_v37, %s1713_s11  ;;  %s2224_s11 = sld [smem:[#allocation8 + $0x3a]]  ;;  %v974_v37 = vmul.f32 %v972_v18, %v2039_v39 }
 0x17b   : > { %v2206_v41 = vpop.permute.xlu0 %483  ;;  %v2208_v42 = vpop.permute.xlu1 %457 }
 0x17d   : > { %879 = vrot.lane.b32.xlu0 %v874_v43, %s1714_s27  ;;  %863 = vrot.lane.b32.xlu1 %v859_v48, %s1714_s27  ;;  %v304_v43 = vadd.f32 %v2103_v17, %v246_v52  ;;  %v245_v17 = vmul.f32 %v244_v24, %v1891_v7  ;;  %v1028_v52 = vstv %s2235_s4  ;;  %s2317_s4 = sld [smem:[#allocation8 + $0x1]] }
 0x17e   : > { %v1030_v29 = vmul.f32 %v1028_v52, %v2039_v39 }
 0x17f   : > { %v2219_v50 = vpop.permute.xlu0 %497  ;;  %v472_v57 = vpop.permute.xlu1 %471  ;;  %v986_v48 = vstv %s2224_s11  ;;  %v362_v49 = vadd.f32 %v2139_v40, %v304_v43  ;;  %v303_v40 = vadd.f32 %v2083_v2, %v245_v17  ;;  %v1029_v17 = vmul.f32 %v1028_v52, %v2045_v44  ;;  %s2305_s11 = sld [smem:[#allocation8 + $0x4e]] }
 0x181   : > { %921 = vrot.lane.b32.xlu0 %v916_v58, %s1715_s21  ;;  %877 = vrot.lane.b32.xlu1 %v873_v25, %s1714_s27  ;;  %v418_v1 = vadd.f32 %v2176_v12, %v362_v49  ;;  %v361_v12 = vadd.f32 %v2121_v9, %v303_v40  ;;  %v1042_v49 = vstv %s2247_s20  ;;  %s2321_s20 = sld [smem:[#allocation8]] }
 0x183   : > { %v2228_v4 = vpop.permute.xlu0 %511  ;;  %v2230_v5 = vpop.permute.xlu1 %485  ;;  %v417_v2 = vadd.f32 %v2155_v51, %v361_v12 }
 0x185   : > { %937 = vrot.lane.b32.xlu0 %v932_v13, %s1716_s8  ;;  %919 = vrot.lane.b32.xlu1 %v915_v14, %s1715_s21  ;;  %v988_v13 = vmul.f32 %v986_v48, %v2039_v39  ;;  %v973_v14 = vmul.f32 %v972_v18, %v2045_v44  ;;  %v987_v18 = vmul.f32 %v986_v48, %v2045_v44 }
 0x186   : > { %v1044_v48 = vmul.f32 %v1042_v49, %v2039_v39  ;;  %v475_v9 = vadd.f32 %v2195_v30, %v417_v2 }
 0x187   : > { %v526_v27 = vpop.permute.xlu0 %525  ;;  %v2241_v35 = vpop.permute.xlu1 %499 }
 0x189   : > { %979 = vrot.lane.b32.xlu0 %v974_v37, %s1717_s28  ;;  %935 = vrot.lane.b32.xlu1 %v931_v38, %s1716_s8  ;;  %v476_v37 = vadd.f32 %v472_v57, %v418_v1  ;;  %s2268_s8 = sld [smem:[#allocation8 + $0x27]]  ;;  %v1086_v1 = vstv %s2261_s29  ;;  %s2325_s29 = sld [smem:[#allocation8 + $0x2]] }
 0x18b   : > { %v2252_v58 = vpop.permute.xlu0 %539  ;;  %v2254_v25 = vpop.permute.xlu1 %513 }
 0x18d   : > { %993 = vrot.lane.b32.xlu0 %v988_v13, %s1717_s28  ;;  %977 = vrot.lane.b32.xlu1 %v973_v14, %s1717_s28 }
 0x18f   : > { %v586_v38 = vpop.permute.xlu0 %585  ;;  %v528_v43 = vpop.permute.xlu1 %527 }
 0x190   : > { %v532_v24 = vadd.f32 %v528_v43, %v476_v37  ;;  %v1043_v43 = vmul.f32 %v1042_v49, %v2045_v44 }
 0x191   : > { %1035 = vrot.lane.b32.xlu0 %v1030_v29, %s1718_s12  ;;  %991 = vrot.lane.b32.xlu1 %v987_v18, %s1717_s28  ;;  %v531_v29 = vadd.f32 %v526_v27, %v475_v9  ;;  %v724_v18 = vstv %s2268_s8  ;;  %v1142_v9 = vstv %s2281_s7  ;;  %s2329_s8 = sld [smem:[#allocation8 + $0x4b]]  ;;  %s2338_s7 = sld [smem:[#allocation8 + $0x20]] }
 0x192   : > { %v590_v57 = vadd.f32 %v586_v38, %v532_v24  ;;  %v1088_v38 = vmul.f32 %v1086_v1, %v2051_v47  ;;  %v726_v30 = vmul.f32 %v724_v18, %v2019_v23  ;;  %v1100_v24 = vstv %s2272_s5  ;;  %s2331_s5 = sld [smem:[#allocation3]] }
 0x193   : > { %v642_v13 = vpop.permute.xlu0 %641  ;;  %v584_v14 = vpop.permute.xlu1 %583  ;;  %v1102_v49 = vmul.f32 %v1100_v24, %v2051_v47 }
 0x194   : > { %v646_v51 = vadd.f32 %v642_v13, %v590_v57  ;;  %v589_v52 = vadd.f32 %v584_v14, %v531_v29 }
 0x195   : > { %1049 = vrot.lane.b32.xlu0 %v1044_v48, %s1718_s12  ;;  %1033 = vrot.lane.b32.xlu1 %v1029_v17, %s1718_s12  ;;  %v1087_v48 = vmul.f32 %v1086_v1, %v2057_v53  ;;  %v725_v17 = vmul.f32 %v724_v18, %v2027_v32 }
 0x197   : > { %v698_v40 = vpop.permute.xlu0 %697  ;;  %v640_v37 = vpop.permute.xlu1 %639 }
 0x198   : > { %v702_v12 = vadd.f32 %v698_v40, %v646_v51  ;;  %v645_v27 = vadd.f32 %v640_v37, %v589_v52  ;;  %v1144_v37 = vmul.f32 %v1142_v9, %v2051_v47 }
 0x199   : > { %1093 = vrot.lane.b32.xlu0 %v1088_v38, %s1720_s13  ;;  %1047 = vrot.lane.b32.xlu1 %v1043_v43, %s1718_s12  ;;  %v1101_v38 = vmul.f32 %v1100_v24, %v2057_v53  ;;  %v1156_v43 = vstv %s2290_s10  ;;  %s2349_s10 = sld [smem:[#allocation8 + $0x28]] }
 0x19a   : > { %v728_v2 = vadd.f32 %v726_v30, %v702_v12  ;;  %v1158_v52 = vmul.f32 %v1156_v43, %v2051_v47  ;;  %v1143_v12 = vmul.f32 %v1142_v9, %v2057_v53  ;;  %v1224_v30 = vstv %s2298_s24  ;;  %s2360_s24 = sld [smem:[#allocation8 + $0x2c]] }
 0x19b   : > { %v780_v57 = vpop.permute.xlu0 %779  ;;  %v696_v13 = vpop.permute.xlu1 %695 }
 0x19c   : > { %v701_v14 = vadd.f32 %v696_v13, %v645_v27  ;;  %v1226_v13 = vmul.f32 %v1224_v30, %v2077_v0 }
 0x19d   : > { %1107 = vrot.lane.b32.xlu0 %v1102_v49, %s1720_s13  ;;  %1091 = vrot.lane.b32.xlu1 %v1087_v48, %s1720_s13  ;;  %v1157_v49 = vmul.f32 %v1156_v43, %v2057_v53  ;;  %v1238_v48 = vstv %s2305_s11  ;;  %s2378_s11 = sld [smem:[#allocation8 + $0x30]] }
 0x19e   : > { %v727_v29 = vadd.f32 %v725_v17, %v701_v14  ;;  %v784_v14 = vadd.f32 %v780_v57, %v728_v2 }
 0x19f   : > { %v838_v51 = vpop.permute.xlu0 %837  ;;  %v778_v40 = vpop.permute.xlu1 %777 }
 0x1a0   : > { %v842_v43 = vadd.f32 %v838_v51, %v784_v14  ;;  %v783_v2 = vadd.f32 %v778_v40, %v727_v29  ;;  %v2566_v51 = vstv %s2317_s4  ;;  %v226_v14 = vstv %s2321_s20  ;;  %s2396_s20 = sld [smem:[#allocation8 + $0x34]] }
 0x1a1   : > { %1149 = vrot.lane.b32.xlu0 %v1144_v37, %s1721_s6  ;;  %1105 = vrot.lane.b32.xlu1 %v1101_v38, %s1720_s13  ;;  %v1240_v37 = vmul.f32 %v1238_v48, %v2077_v0  ;;  %v1225_v38 = vmul.f32 %v1224_v30, %v1899_v11  ;;  %v1239_v30 = vmul.f32 %v1238_v48, %v1899_v11  ;;  %v238_v48 = vstv %s2325_s29  ;;  %s2416_s29 = sld [smem:[#allocation8 + $0x3c]] }
 0x1a2   : > { %v228_v47 = vmul.f32 %v226_v14, %v1899_v11 }
 0x1a3   : > { %v894_v1 = vpop.permute.xlu0 %893  ;;  %v836_v18 = vpop.permute.xlu1 %835 }
 0x1a4   : > { %v898_v57 = vadd.f32 %v894_v1, %v842_v43  ;;  %v233_v1 = vmul.f32 %v2566_v51, %v1891_v7 }
 0x1a5   : > { %1163 = vrot.lane.b32.xlu0 %v1158_v52, %s1721_s6  ;;  %1147 = vrot.lane.b32.xlu1 %v1143_v12, %s1721_s6 }
 0x1a7   : > { %v952_v24 = vpop.permute.xlu0 %951  ;;  %v892_v27 = vpop.permute.xlu1 %891 }
 0x1a9   : > { %1231 = vrot.lane.b32.xlu0 %v1226_v13, %s1711_s30  ;;  %1161 = vrot.lane.b32.xlu1 %v1157_v49, %s1721_s6  ;;  %v841_v13 = vadd.f32 %v836_v18, %v783_v2  ;;  %v956_v49 = vadd.f32 %v952_v24, %v898_v57  ;;  %v227_v24 = vmul.f32 %v226_v14, %v1891_v7  ;;  %v1204_v2 = vstv %s2329_s8  ;;  %s2418_s8 = sld [smem:[#allocation8 + $0x25]] }
 0x1aa   : > { %v275_v57 = vadd.f32 %v2061_v54, %v233_v1  ;;  %v1206_v14 = vmul.f32 %v1204_v2, %v2077_v0 }
 0x1ab   : > { %v1008_v17 = vpop.permute.xlu0 %1007  ;;  %v950_v9 = vpop.permute.xlu1 %949 }
 0x1ac   : > { %v333_v51 = vadd.f32 %v2101_v15, %v275_v57  ;;  %v1205_v15 = vmul.f32 %v1204_v2, %v1899_v11  ;;  %v240_v2 = vmul.f32 %v238_v48, %v1899_v11 }
 0x1ad   : > { %1245 = vrot.lane.b32.xlu0 %v1240_v37, %s1711_s30  ;;  %1229 = vrot.lane.b32.xlu1 %v1225_v38, %s1711_s30  ;;  %v897_v37 = vadd.f32 %v892_v27, %v841_v13  ;;  %v1012_v38 = vadd.f32 %v1008_v17, %v956_v49  ;;  %v239_v13 = vmul.f32 %v238_v48, %v1891_v7 }
 0x1af   : > { %v1066_v52 = vpop.permute.xlu0 %1065  ;;  %v1006_v12 = vpop.permute.xlu1 %1005  ;;  %v955_v18 = vadd.f32 %v950_v9, %v897_v37  ;;  %v289_v54 = vadd.f32 %v2071_v59, %v239_v13 }
 0x1b0   : > { %v1070_v43 = vadd.f32 %v1066_v52, %v1012_v38  ;;  %v389_v38 = vadd.f32 %v2137_v60, %v333_v51 }
 0x1b1   : > { %1243 = vrot.lane.b32.xlu1 %v1239_v30, %s1711_s30  ;;  %v222_v30 = vstv %s2331_s5  ;;  %v1011_v27 = vadd.f32 %v1006_v12, %v955_v18  ;;  %v347_v1 = vadd.f32 %v2111_v20, %v289_v54  ;;  %s2428_s5 = sld [smem:[#allocation8 + $0x26]] }
 0x1b2   : > { %v230_v49 = vadd.f32 %v228_v47, %v222_v30  ;;  %v229_v37 = vadd.f32 %v227_v24, %v222_v30 }
 0x1b3   : > { %v1122_v29 = vpop.permute.xlu0 %1121  ;;  %v1064_v40 = vpop.permute.xlu1 %1063 }
 0x1b4   : > { %v1126_v17 = vadd.f32 %v1122_v29, %v1070_v43  ;;  %v1069_v9 = vadd.f32 %v1064_v40, %v1011_v27  ;;  %v262_v12 = vadd.f32 %v2073_v61, %v230_v49  ;;  %v261_v29 = vadd.f32 %v2063_v55, %v229_v37 }
 0x1b5   : > { %v445_v61 = vadd.f32 %v2174_v6, %v389_v38  ;;  %v403_v55 = vadd.f32 %v2145_v45, %v347_v1  ;;  %v730_v27 = vstv %s2349_s10  ;;  %s2441_s10 = sld [smem:[#allocation8 + $0x44]] }
 0x1b6   : > { %v318_v59 = vadd.f32 %v2113_v21, %v262_v12 }
 0x1b7   : > { %v1178_v39 = vpop.permute.xlu0 %1177  ;;  %v1120_v53 = vpop.permute.xlu1 %1119  ;;  %v503_v51 = vadd.f32 %v2219_v50, %v445_v61 }
 0x1b8   : > { %v1182_v52 = vadd.f32 %v1178_v39, %v1126_v17  ;;  %v1125_v7 = vadd.f32 %v1120_v53, %v1069_v9  ;;  %v648_v39 = vstv %s2338_s7  ;;  %v317_v53 = vadd.f32 %v2092_v8, %v261_v29  ;;  %s2432_s7 = sld [smem:[#allocation8 + $0x40]] }
 0x1b9   : > { %v376_v20 = vadd.f32 %v2147_v46, %v318_v59  ;;  %v649_v30 = vmul.f32 %v648_v39, %v2009_v16  ;;  %v461_v8 = vadd.f32 %v2185_v19, %v403_v55  ;;  %v290_v17 = vadd.f32 %v2094_v10, %v240_v2  ;;  %v2385_v16 = vld [vmem:[#allocation2 + $0x8] sm:$0xff] }
 0x1ba   : > { %v1208_v47 = vadd.f32 %v1206_v14, %v1182_v52  ;;  %v375_v57 = vadd.f32 %v2129_v33, %v317_v53  ;;  %v2581_v19 = vstv %s2317_s4  ;;  %v731_v10 = vmul.f32 %v730_v27, %v2027_v32  ;;  %s2405_s4 = sld [smem:[#allocation8 + $0x38]] }
 0x1bb   : > { %v1260_v18 = vpop.permute.xlu0 %1259  ;;  %v1176_v43 = vpop.permute.xlu1 %1175  ;;  %v432_v45 = vadd.f32 %v2187_v22, %v376_v20  ;;  %v517_v33 = vadd.f32 %v2228_v4, %v461_v8  ;;  %v234_v22 = vmul.f32 %v2385_v16, %v2581_v19  ;;  %v786_v9 = vstv %s2360_s24  ;;  %s2454_s24 = sld [smem:[#allocation8 + $0x4c]] }
 0x1bc   : > { %v1264_v40 = vadd.f32 %v1260_v18, %v1208_v47  ;;  %v1181_v60 = vadd.f32 %v1176_v43, %v1125_v7  ;;  %v431_v11 = vadd.f32 %v2165_v62, %v375_v57  ;;  %v348_v62 = vadd.f32 %v2131_v34, %v290_v17 }
 0x1bd   : > { %v490_v48 = vadd.f32 %v2230_v5, %v432_v45  ;;  %v276_v14 = vadd.f32 %v2085_v3, %v234_v22  ;;  %v844_v47 = vstv %s2378_s11  ;;  %v788_v53 = vmul.f32 %v786_v9, %v2019_v23 }
 0x1be   : > { %1293 = vrot.lane.b32.xlu0 %v1264_v40, %s1720_s13  ;;  %v1207_v24 = vadd.f32 %v1205_v15, %v1181_v60  ;;  %v489_v4 = vadd.f32 %v2206_v41, %v431_v11  ;;  %v404_v37 = vadd.f32 %v2167_v63, %v348_v62  ;;  %v787_v41 = vmul.f32 %v786_v9, %v2027_v32  ;;  %v1584_v63 = vld [vmem:[#allocation2 + $0xb] sm:$0xff] }
 0x1bf   : > { %v554_v21 = vpop.permute.xlu0 %553  ;;  %v1258_v6 = vpop.permute.xlu1 %1257  ;;  %v334_v38 = vadd.f32 %v2123_v26, %v276_v14  ;;  %v845_v43 = vmul.f32 %v844_v47, %v2033_v36  ;;  %v900_v15 = vstv %s2396_s20  ;;  %v712_v2 = vstv %s2418_s8  ;;  %v2584_v14 = vld [vmem:[#allocation14_spill] sm:$0xff] }
 0x1c0   : > { %v2375_v46 = vadd.f32 %v554_v21, %v503_v51  ;;  %v1263_v50 = vadd.f32 %v1258_v6, %v1207_v24  ;;  %v545_v54 = vadd.f32 %v2252_v58, %v489_v4  ;;  %v462_v7 = vadd.f32 %v2208_v42, %v404_v37  ;;  %v2582_v6 = vld [vmem:[#allocation13_spill] sm:$0xff]  ;;  %v2583_v4 = vld [vmem:[#allocation16_spill] sm:$0xff] }
 0x1c1   : > { %v650_v58 = vmul.f32 %v1584_v63, %v648_v39  ;;  %v390_v29 = vadd.f32 %v2157_v56, %v334_v38  ;;  %v732_v56 = vmul.f32 %v730_v27, %v2019_v23  ;;  %v958_v61 = vstv %s2405_s4 }
 0x1c2   : > { %653 = vrot.lane.b32.xlu0 %v649_v30, %s1721_s6  ;;  %1291 = vrot.lane.b32.xlu1 %v1263_v50, %s1720_s13  ;;  %v901_v60 = vmul.f32 %v900_v15, %v2033_v36  ;;  %v959_v51 = vmul.f32 %v958_v61, %v2045_v44  ;;  %v1014_v24 = vstv %s2416_s29  ;;  %v846_v36 = vmul.f32 %v844_v47, %v2582_v6 }
 0x1c3   : > { %v568_v13 = vpop.permute.xlu0 %567  ;;  %v542_v49 = vpop.permute.xlu1 %541  ;;  %v446_v26 = vadd.f32 %v2197_v28, %v390_v29  ;;  %v714_v30 = vmul.f32 %v712_v2, %v2019_v23  ;;  %v1015_v17 = vmul.f32 %v1014_v24, %v2045_v44  ;;  %v902_v11 = vmul.f32 %v900_v15, %v2582_v6  ;;  %v2585_v29 = vld [vmem:[#allocation15_spill] sm:$0xff] }
 0x1c4   : > { %v573_v52 = vadd.f32 %v568_v13, %v517_v33  ;;  %v2394_v5 = vadd.f32 %v542_v49, %v490_v48  ;;  %v718_v33 = vstv %s2428_s5  ;;  %v1072_v13 = vstv %s2432_s7 }
 0x1c5   : > { %v720_v22 = vmul.f32 %v718_v33, %v2019_v23  ;;  %v960_v37 = vmul.f32 %v958_v61, %v2584_v14  ;;  %v719_v23 = vmul.f32 %v718_v33, %v2027_v32  ;;  %v1210_v63 = vstv %s2454_s24 }
 0x1c6   : > { %735 = vrot.lane.b32.xlu0 %v731_v10, %s1711_s30  ;;  %599 = vrot.lane.b32.xlu1 %v1938_v31, %s1720_s13  ;;  %v518_v31 = vadd.f32 %v2254_v25, %v462_v7  ;;  %v504_v25 = vadd.f32 %v2241_v35, %v446_v26  ;;  %v1016_v7 = vmul.f32 %v1014_v24, %v2584_v14 }
 0x1c7   : > { %v598_v34 = vpop.permute.xlu0 %597  ;;  %v556_v12 = vpop.permute.xlu1 %555  ;;  %v1211_v47 = vmul.f32 %v2385_v16, %v1210_v63 }
 0x1c8   : > { %v2409_v3 = vadd.f32 %v598_v34, %v545_v54  ;;  %v560_v28 = vadd.f32 %v556_v12, %v504_v25  ;;  %v1128_v54 = vstv %s2441_s10  ;;  %v1212_v25 = vmul.f32 %v1210_v63, %v2077_v0 }
 0x1c9   : > { %v1129_v38 = vmul.f32 %v1128_v54, %v2583_v4 }
 0x1ca   : > { %791 = vrot.lane.b32.xlu0 %v787_v41, %s1712_s9  ;;  %655 = vrot.lane.b32.xlu1 %v650_v58, %s1721_s6 }
 0x1cb   : > { %v614_v1 = vpop.permute.xlu0 %613  ;;  %v570_v18 = vpop.permute.xlu1 %569 }
 0x1cc   : > { %v574_v42 = vadd.f32 %v570_v18, %v518_v31  ;;  %v618_v35 = vadd.f32 %v614_v1, %v560_v28  ;;  %v1074_v31 = vmul.f32 %v1072_v13, %v2585_v29 }
 0x1ce   : > { %849 = vrot.lane.b32.xlu0 %v845_v43, %s1714_s27  ;;  %737 = vrot.lane.b32.xlu1 %v732_v56, %s1711_s30  ;;  %v1130_v43 = vmul.f32 %v1128_v54, %v2585_v29 }
 0x1cf   : > { %v628_v39 = vpop.permute.xlu0 %627  ;;  %v612_v59 = vpop.permute.xlu1 %611 }
 0x1d0   : > { %v632_v40 = vadd.f32 %v628_v39, %v574_v42  ;;  %v617_v27 = vadd.f32 %v612_v59, %v2375_v46  ;;  %v713_v46 = vmul.f32 %v712_v2, %v2027_v32 }
 0x1d2   : > { %905 = vrot.lane.b32.xlu0 %v901_v60, %s1715_s21  ;;  %793 = vrot.lane.b32.xlu1 %v788_v53, %s1712_s9 }
 0x1d3   : > { %v670_v55 = vpop.permute.xlu0 %669  ;;  %v626_v20 = vpop.permute.xlu1 %625 }
 0x1d4   : > { %v674_v57 = vadd.f32 %v670_v55, %v618_v35  ;;  %v631_v21 = vadd.f32 %v626_v20, %v573_v52  ;;  %v1073_v52 = vmul.f32 %v1072_v13, %v2583_v4 }
 0x1d6   : > { %963 = vrot.lane.b32.xlu0 %v959_v51, %s1717_s28  ;;  %851 = vrot.lane.b32.xlu1 %v846_v36, %s1714_s27  ;;  %v2446_v8 = vadd.f32 %v714_v30, %v674_v57  ;;  %s1501_s27 = sld [smem:[#allocation8 + $0x50]] }
 0x1d7   : > { %v684_v45 = vpop.permute.xlu0 %683  ;;  %v668_v50 = vpop.permute.xlu1 %667 }
 0x1d8   : > { %v688_v48 = vadd.f32 %v684_v45, %v632_v40  ;;  %v673_v19 = vadd.f32 %v668_v50, %v617_v27 }
 0x1da   : > { %1019 = vrot.lane.b32.xlu0 %v1015_v17, %s1718_s12  ;;  %907 = vrot.lane.b32.xlu1 %v902_v11, %s1715_s21  ;;  %v722_v49 = vadd.f32 %v720_v22, %v688_v48  ;;  %v715_v10 = vadd.f32 %v713_v46, %v673_v19  ;;  %s1457_s21 = sld [smem:[#allocation8 + $0x24]] }
 0x1db   : > { %v752_v44 = vpop.permute.xlu0 %751  ;;  %v682_v9 = vpop.permute.xlu1 %681 }
 0x1dc   : > { %v687_v62 = vadd.f32 %v682_v9, %v631_v21  ;;  %v1266_v1 = vstv %s1501_s27  ;;  %v756_v57 = vadd.f32 %v752_v44, %v2446_v8 }
 0x1dd   : > { %v1267_v42 = vmul.f32 %v2385_v16, %v1266_v1  ;;  %v1268_v61 = vmul.f32 %v1266_v1, %v2077_v0 }
 0x1de   : > { %1077 = vrot.lane.b32.xlu0 %v1073_v52, %s1720_s13  ;;  %965 = vrot.lane.b32.xlu1 %v960_v37, %s1717_s28  ;;  %v721_v34 = vadd.f32 %v719_v23, %v687_v62 }
 0x1df   : > { %v766_v12 = vpop.permute.xlu0 %765  ;;  %v750_v41 = vpop.permute.xlu1 %749 }
 0x1e0   : > { %v770_v30 = vadd.f32 %v766_v12, %v722_v49  ;;  %v755_v27 = vadd.f32 %v750_v41, %v715_v10 }
 0x1e2   : > { %1133 = vrot.lane.b32.xlu0 %v1129_v38, %s1721_s6  ;;  %1021 = vrot.lane.b32.xlu1 %v1016_v7, %s1718_s12  ;;  %s203_s12 = scalar_lea.vmem [#allocation9], %s1419_s23  ;;  %s1313_s23 = scalar_lea.sflag [#allocation6], %s1875_s18 }
 0x1e3   : > { %v810_v58 = vpop.permute.xlu0 %809  ;;  %v764_v32 = vpop.permute.xlu1 %763 }
 0x1e4   : > { %v814_v36 = vadd.f32 %v810_v58, %v756_v57  ;;  %v769_v19 = vadd.f32 %v764_v32, %v721_v34 }
 0x1e6   : > { %1215 = vrot.lane.b32.xlu0 %v1211_v47, %s1711_s30  ;;  %1079 = vrot.lane.b32.xlu1 %v1074_v31, %s1720_s13 }
 0x1e7   : > { %v824_v18 = vpop.permute.xlu0 %823  ;;  %v808_v26 = vpop.permute.xlu1 %807 }
 0x1e8   : > { %v828_v11 = vadd.f32 %v824_v18, %v770_v30  ;;  %v813_v33 = vadd.f32 %v808_v26, %v755_v27 }
 0x1ea   : > { %1271 = vrot.lane.b32.xlu0 %v1267_v42, %s1712_s9  ;;  %1135 = vrot.lane.b32.xlu1 %v1130_v43, %s1721_s6  ;;  %s1508_s6 = sshll.u32 %s1769_s2, 8  ;;  %s1722_s2 = smov [#allocation9]  }
 0x1eb   : > { %v866_v56 = vpop.permute.xlu0 %865  ;;  %v822_v15 = vpop.permute.xlu1 %821  ;;  %s2507_s4 = scalar_lea.hbm %s2554_s3, %s1508_s6  ;;  %s1637_s8 = sshll.u32 %s1722_s2, 4  ;;  %s1638_s8 = int_to_ptr.vmem [resolvable:$false] %s1637_s8 }
 0x1ec   : > { %v870_v45 = vadd.f32 %v866_v56, %v814_v36  ;;  %v827_v62 = vadd.f32 %v822_v15, %v769_v19  ;;  %s1639_s5 = scalar_lea.vmem %s1638_s8, 512 }
 0x1ee   : > { %1217 = vrot.lane.b32.xlu1 %v1212_v25, %s1711_s30  ;;  %s2482_s30 = sld [smem:[#allocation8 + $0x49]] }
 0x1ef   : > { %v880_v39 = vpop.permute.xlu0 %879  ;;  %v864_v59 = vpop.permute.xlu1 %863 }
 0x1f0   : > { %v884_v22 = vadd.f32 %v880_v39, %v828_v11  ;;  %v869_v46 = vadd.f32 %v864_v59, %v813_v33 }
 0x1f2   : > { %1273 = vrot.lane.b32.xlu1 %v1268_v61, %s1712_s9  ;;  %s2484_s9 = sld [smem:[#allocation8 + $0x4a]] }
 0x1f3   : > { %v922_v28 = vpop.permute.xlu0 %921  ;;  %v878_v40 = vpop.permute.xlu1 %877 }
 0x1f4   : > { %v926_v48 = vadd.f32 %v922_v28, %v870_v45  ;;  %v1192_v9 = vstv %s2482_s30  ;;  %v883_v52 = vadd.f32 %v878_v40, %v827_v62 }
 0x1f5   : > { %v1194_v41 = vmul.f32 %v1192_v9, %v2077_v0  ;;  %v1193_v15 = vmul.f32 %v2385_v16, %v1192_v9 }
 0x1f7   : > { %v938_v60 = vpop.permute.xlu0 %937  ;;  %v920_v53 = vpop.permute.xlu1 %919 }
 0x1f8   : > { %v942_v4 = vadd.f32 %v938_v60, %v884_v22  ;;  %v925_v49 = vadd.f32 %v920_v53, %v869_v46  ;;  %v1198_v34 = vstv %s2484_s9 }
 0x1f9   : > { %v1200_v26 = vmul.f32 %v1198_v34, %v2077_v0  ;;  %v1199_v53 = vmul.f32 %v2385_v16, %v1198_v34 }
 0x1fb   : > { %v980_v35 = vpop.permute.xlu0 %979  ;;  %v936_v55 = vpop.permute.xlu1 %935 }
 0x1fc   : > { %v984_v8 = vadd.f32 %v980_v35, %v926_v48  ;;  %v941_v38 = vadd.f32 %v936_v55, %v883_v52 }
 0x1ff   : > { %v994_v20 = vpop.permute.xlu0 %993  ;;  %v978_v51 = vpop.permute.xlu1 %977 }
 0x200   : > { %v998_v14 = vadd.f32 %v994_v20, %v942_v4  ;;  %v983_v37 = vadd.f32 %v978_v51, %v925_v49 }
 0x203   : > { %v1036_v24 = vpop.permute.xlu0 %1035  ;;  %v992_v2 = vpop.permute.xlu1 %991 }
 0x204   : > { %v1040_v10 = vadd.f32 %v1036_v24, %v984_v8  ;;  %v997_v32 = vadd.f32 %v992_v2, %v941_v38 }
 0x207   : > { %v1050_v21 = vpop.permute.xlu0 %1049  ;;  %v1034_v6 = vpop.permute.xlu1 %1033 }
 0x208   : > { %v1054_v7 = vadd.f32 %v1050_v21, %v998_v14  ;;  %v1039_v63 = vadd.f32 %v1034_v6, %v983_v37  ;;  %v706_v21 = vstv %s1457_s21 }
 0x20b   : > { %v1094_v50 = vpop.permute.xlu0 %1093  ;;  %v1048_v17 = vpop.permute.xlu1 %1047 }
 0x20c   : > { %v1098_v23 = vadd.f32 %v1094_v50, %v1040_v10  ;;  %v1053_v42 = vadd.f32 %v1048_v17, %v997_v32  ;;  %v1585_v50 = vld [vmem:[#allocation2 + $0x4] sm:$0xff] }
 0x20d   : > { %v707_v17 = vmul.f32 %v1585_v50, %v706_v21 }
 0x20f   : > { %v1108_v13 = vpop.permute.xlu0 %1107  ;;  %v1092_v44 = vpop.permute.xlu1 %1091 }
 0x210   : > { %v1112_v47 = vadd.f32 %v1108_v13, %v1054_v7  ;;  %v1097_v29 = vadd.f32 %v1092_v44, %v1039_v63  ;;  %v1586_v13 = vld [vmem:[#allocation2 + $0xc] sm:$0xff] }
 0x211   : > { %v708_v44 = vmul.f32 %v1586_v13, %v706_v21 }
 0x213   : > { %v1150_v54 = vpop.permute.xlu0 %1149  ;;  %v1106_v12 = vpop.permute.xlu1 %1105 }
 0x214   : > { %v1154_v58 = vadd.f32 %v1150_v54, %v1098_v23  ;;  %v1111_v25 = vadd.f32 %v1106_v12, %v1053_v42 }
 0x216   : > { %v1196_v31 = vadd.f32 %v1194_v41, %v1154_v58 }
 0x217   : > { %v1164_v1 = vpop.permute.xlu0 %1163  ;;  %v1148_v18 = vpop.permute.xlu1 %1147 }
 0x218   : > { %v1168_v43 = vadd.f32 %v1164_v1, %v1112_v47  ;;  %v1153_v56 = vadd.f32 %v1148_v18, %v1097_v29 }
 0x21a   : > { %v1202_v39 = vadd.f32 %v1200_v26, %v1168_v43  ;;  %v1195_v59 = vadd.f32 %v1193_v15, %v1153_v56 }
 0x21b   : > { %v1232_v61 = vpop.permute.xlu0 %1231  ;;  %v1162_v28 = vpop.permute.xlu1 %1161 }
 0x21c   : > { %v1236_v40 = vadd.f32 %v1232_v61, %v1196_v31  ;;  %v1167_v60 = vadd.f32 %v1162_v28, %v1111_v25  ;;  %v1587_v28 = vld [vmem:[#allocation2 + $0x10] sm:$0xff] }
 0x21e   : > { %1283 = vrot.lane.b32.xlu1 %v1236_v40, %s1720_s13  ;;  %v1201_v35 = vadd.f32 %v1199_v53, %v1167_v60 }
 0x21f   : > { %v1230_v55 = vpop.permute.xlu1 %1229  ;;  %v1246_v0 = vpop.permute.xlu0 %1245 }
 0x220   : > { %v1235_v20 = vadd.f32 %v1230_v55, %v1195_v59  ;;  %v1250_v51 = vadd.f32 %v1246_v0, %v1202_v39 }
 0x222   : > { %1281 = vrot.lane.b32.xlu0 %v1235_v20, %s1720_s13  ;;  %s1326_s13 = sshll.u32 %s203_s12, 4  ;;  %s2502_s13 = int_to_ptr.vmem [resolvable:$true] %s1326_s13 }
 0x223   : > { %v1244_v24 = vpop.permute.xlu1 %1243  ;;  %s1633_s29 = scalar_lea.vmem %s2502_s13, 256  ;;  %p1640_p10 = scmp.lt.s32.totalorder %s2502_s13, %s1638_s8 }
 0x224   : > { %v1249_v6 = vadd.f32 %v1244_v24, %v1201_v35  ;;  %p1634_p5 = scmp.ne.s32.totalorder %s2502_s13, %s1633_s29  ;;  %p1641_p1 = scmp.lt.s32.totalorder %s1639_s5, %s1633_s29 }
 0x226   : > { %p1635_p8 = pnand %p1634_p5, %p2586_p12  ;;  %p1642_p4 = por %p1641_p1, %p1640_p10 }
 0x228   : > { %p1636_p9 = pneg %p1635_p8 }
 0x22a   : > { %p1643_p11 = pnand %p1642_p4, %p1636_p9 }
 0x230   : > { %v1294_v2 = vpop.permute.xlu0 %1293 }
 0x231   : > { %v1298_v57 = vadd.f32 %v1294_v2, %v1250_v51 }
 0x233   : > { %1303 = vrot.lane.b32.xlu1 %v1298_v57, %s1717_s28 }
 0x234   : > { %v654_v36 = vpop.permute.xlu0 %653  ;;  %v1292_v30 = vpop.permute.xlu1 %1291 }
 0x235   : > { %v659_v27 = vadd.f32 %v654_v36, %v2409_v3  ;;  %v1297_v45 = vadd.f32 %v1292_v30, %v1249_v6 }
 0x237   : > { %1301 = vrot.lane.b32.xlu0 %v1297_v45, %s1717_s28  ;;  %v709_v11 = vadd.f32 %v707_v17, %v659_v27  ;;  %s1493_s28 = sld [smem:[#allocation8 + $0x48]] }
 0x238   : > { %v736_v33 = vpop.permute.xlu0 %735  ;;  %v600_v48 = vpop.permute.xlu1 %599 }
 0x239   : > { %v604_v19 = vadd.f32 %v600_v48, %v2394_v5  ;;  %v741_v10 = vadd.f32 %v736_v33, %v709_v11 }
 0x23c   : > { %v792_v22 = vpop.permute.xlu0 %791  ;;  %v656_v46 = vpop.permute.xlu1 %655 }
 0x23d   : > { %v660_v8 = vadd.f32 %v656_v46, %v604_v19  ;;  %v797_v37 = vadd.f32 %v792_v22, %v741_v10  ;;  %v1186_v32 = vstv %s1493_s28 }
 0x23e   : > { %v1187_v42 = vmul.f32 %v2385_v16, %v1186_v32  ;;  %v1188_v40 = vmul.f32 %v1587_v28, %v1186_v32 }
 0x23f   : > { %v710_v9 = vadd.f32 %v708_v44, %v660_v8 }
 0x240   : > { %v850_v62 = vpop.permute.xlu0 %849  ;;  %v738_v4 = vpop.permute.xlu1 %737 }
 0x241   : > { %v855_v23 = vadd.f32 %v850_v62, %v797_v37  ;;  %v742_v5 = vadd.f32 %v738_v4, %v710_v9 }
 0x244   : > { %v906_v49 = vpop.permute.xlu0 %905  ;;  %v794_v3 = vpop.permute.xlu1 %793 }
 0x245   : > { %v911_v41 = vadd.f32 %v906_v49, %v855_v23  ;;  %v798_v63 = vadd.f32 %v794_v3, %v742_v5 }
 0x248   : > { %v964_v52 = vpop.permute.xlu0 %963  ;;  %v852_v14 = vpop.permute.xlu1 %851 }
 0x249   : > { %v969_v34 = vadd.f32 %v964_v52, %v911_v41  ;;  %v856_v47 = vadd.f32 %v852_v14, %v798_v63 }
 0x24c   : > { %v1020_v54 = vpop.permute.xlu0 %1019  ;;  %v908_v12 = vpop.permute.xlu1 %907 }
 0x24d   : > { %v1025_v58 = vadd.f32 %v1020_v54, %v969_v34  ;;  %v912_v18 = vadd.f32 %v908_v12, %v856_v47 }
 0x250   : > { %v1078_v38 = vpop.permute.xlu0 %1077  ;;  %v966_v7 = vpop.permute.xlu1 %965 }
 0x251   : > { %v1083_v29 = vadd.f32 %v1078_v38, %v1025_v58  ;;  %v970_v43 = vadd.f32 %v966_v7, %v912_v18 }
 0x254   : > { %v1134_v31 = vpop.permute.xlu0 %1133  ;;  %v1022_v1 = vpop.permute.xlu1 %1021 }
 0x255   : > { %v1139_v26 = vadd.f32 %v1134_v31, %v1083_v29  ;;  %v1026_v25 = vadd.f32 %v1022_v1, %v970_v43 }
 0x257   : > { %v1189_v56 = vadd.f32 %v1187_v42, %v1139_v26 }
 0x258   : > { %v1080_v15 = vpop.permute.xlu1 %1079  ;;  %v1216_v35 = vpop.permute.xlu0 %1215 }
 0x259   : > { %v1084_v39 = vadd.f32 %v1080_v15, %v1026_v25  ;;  %v1221_v16 = vadd.f32 %v1216_v35, %v1189_v56 }
 0x25c   : > { %v1136_v59 = vpop.permute.xlu1 %1135  ;;  %v1272_v0 = vpop.permute.xlu0 %1271 }
 0x25d   : > { %v1140_v61 = vadd.f32 %v1136_v59, %v1084_v39  ;;  %v1277_v6 = vadd.f32 %v1272_v0, %v1221_v16 }
 0x25f   : > { %v1190_v60 = vadd.f32 %v1188_v40, %v1140_v61 }
 0x260   : > { %v1218_v53 = vpop.permute.xlu1 %1217 }
 0x261   : > { %v1222_v20 = vadd.f32 %v1218_v53, %v1190_v60 }
 0x264   : > { %v1274_v55 = vpop.permute.xlu1 %1273 }
 0x265   : > { %v1278_v24 = vadd.f32 %v1274_v55, %v1222_v20 }
 0x290   : > { %v1284_v51 = vpop.permute.xlu1 %1283 }
 0x291   : > { %v1288_v2 = vadd.f32 %v1284_v51, %v1278_v24 }
 0x294   : > { %v1282_v57 = vpop.permute.xlu0 %1281 }
 0x295   : > { %v1287_v30 = vadd.f32 %v1282_v57, %v1277_v6 }
 0x2a5   : > { %v1304_v21 = vpop.permute.xlu1 %1303 }
 0x2a6   : > { %v1308_v36 = vadd.f32 %v1304_v21, %v1288_v2 }
 0x2a8   : > { %1311 = vst.msk [vmem:[%s203_s12 + $0x8] sm:$0xff] %vm1309_vm2, %v1308_v36 }
 0x2a9   : > { %v1302_v27 = vpop.permute.xlu0 %1301 }
 0x2aa   : > { %v1307_v45 = vadd.f32 %v1302_v27, %v1287_v30 }
 0x2ac   : > { %1310 = vst.msk [vmem:[%s203_s12] sm:$0xff] %vm1309_vm2, %v1307_v45 }
 0x2ad   : > { %1646 = shalt.err (!%p1643_p11)
}
 0x2ae   : > { %s1647_s7 = scalar_lea.hbm %s2507_s4, 256  ;;  %s1651_s27 = scalar_lea.hbm %s2554_s3, 512 }
 0x2af   : > { %p1648_p0 = scmp.ne.s32.totalorder %s2507_s4, %s1647_s7  ;;  %p1652_p6 = scmp.lt.u32.totalorder %s2507_s4, %s2554_s3 }
 0x2b0   : > { %p1653_p3 = scmp.lt.u32.totalorder %s1651_s27, %s1647_s7  ;;  %p1655_p5 = scmp.lt.u32.totalorder %s1647_s7, %s2507_s4 }
 0x2b1   : > { %p1649_p2 = pnand %p1648_p0, %p2586_p12 }
 0x2b2   : > { %p1654_p13 = por %p1653_p3, %p1652_p6 }
 0x2b3   : > { %p1650_p7 = pneg %p1649_p2 }
 0x2b4   : > { %p1656_p8 = por %p1655_p5, %p1654_p13 }
 0x2b6   : > { %p1657_p9 = pnand %p1656_p8, %p1650_p7 }
 0x2b8   : > { %1660 = shalt.err (!%p1657_p9)
}
 0x2b9   : > { %s1723_s21 = smov 128   ;;  %s1724_s28 = smov 8  }
 0x2ba   : > { %1515 = dma.vmem_to_hbm [thread:$0]  (%p2586_p12), %s2502_s13, 256, %s2507_s4, %s1313_s23, %s1723_s21, %s1723_s21, %s1724_s28  }
 0x2bb PF: > { %s1341_s12 = sand.u32 1, %s1691_s14   ;;  %p2587_p10 = scmp.ne.s32.totalorder %s2570_s26, 0 }
 0x2bc   : > { %p2588_p1 = scmp.ge.s32.totalorder %s1703_s17, 2  ;;  %s1342_s6 = scalar_lea.sflag [#allocation6], %s1341_s12 }
 0x2be   : > { %p1526_p4 = pnand %p2588_p1, %p2587_p10 }
 0x2c0   : > { %1686 = dma.done.wait (!%p1526_p4), %s1342_s6, 256  }
 0x2c1   : > { %1688 = vsyncadd (!%p1526_p4), %s1342_s6, 4294967040  ;;  %p18_p11 = scmp.ge.s32.totalorder %s1773_s19, 4   ;;  %s2589_s14 = smov %s1695_s15 }
 0x2c2   : > { %s2590_s15 = smov %s1699_s16  ;;  %s2591_s16 = smov %s1785_s22 }
 0x2c3   : > { %s2592_s17 = smov %s1773_s19  ;;  %20 = sbr.rel (!%p18_p11) target bundleno = 8 (0x8), region = 82 }
 0x2ca   :  { %1347 = vsyncpa [#allocation5], 1 }
 0x2cb   :  { %1349 = vsyncpa [#allocation5 + $0x1], 1 }
 0x2cc   :  { %1350 = vsyncpa [#allocation6], 1 }
 0x2cd   :  { %1352 = vsyncpa [#allocation6 + $0x1], 1 }
 0x2ce   :  { %1353 = vsyncpa [#allocation7], 1 }
 0x2cf   :  { %1355 = vsyncpa [#allocation7 + $0x1], 1 }

</bundles_post_ra>
